<compile_context>
chip_gen: v7x
topology: tpu7x:2x2x1
jax: 0.10.0
libtpu: 0.0.40
codegen_flags: <defaults>
</compile_context>

<pallas_src>
import functools

import jax
import jax.numpy as jnp
import numpy as np
from jax.experimental import pallas as pl
from jax.experimental.pallas import tpu as pltpu

LN_EPS = 1e-5       # nn.LayerNorm default
_DFF_CHUNK = 1024   # FFN K-tile (only kicks in for production-sized dff)


# ----------------------------------------------------------------------------------
# Kernel
# ----------------------------------------------------------------------------------
def _cfa_layer_kernel(nhead, has_pos_q, has_pos_k, *refs):
    """One batch block per grid step.  All refs live in VMEM.

    Inputs (in order): tgt (B,Lq,E) bf16, mem (B,Lk,E) bf16,
                       [pos_q (B,Lq,E) bf16], [pos_k (B,Lk,E) bf16],
                       wq/wk/wv (E,E) bf16 (scale pre-folded into wq), bq/bk/bv (1,E) f32,
                       wo (E,E) bf16, bo (1,E) f32,
                       w1 (E,dff) bf16, b1 (1,dff) f32, w2 (dff,E) bf16, b2 (1,E) f32,
                       g1/be1/g2/be2 (1,E) f32,
                       out (B, Lq, E) bf16.
    """
    it = iter(refs)
    tgt_ref = next(it)
    mem_ref = next(it)
    posq_ref = next(it) if has_pos_q else None
    posk_ref = next(it) if has_pos_k else None
    wq_ref, wk_ref, wv_ref = next(it), next(it), next(it)
    bq_ref, bk_ref, bv_ref = next(it), next(it), next(it)
    wo_ref, bo_ref = next(it), next(it)
    w1_ref, b1_ref = next(it), next(it)
    w2_ref, b2_ref = next(it), next(it)
    g1_ref, be1_ref, g2_ref, be2_ref = next(it), next(it), next(it), next(it)
    out_ref = next(it)

    f32, bf16 = jnp.float32, jnp.bfloat16
    B, Lq, E = tgt_ref.shape
    Lk = mem_ref.shape[1]
    hd = E // nhead
    dff = w1_ref.shape[1]

    def matmul(x, w, b=None):
        # x: (M, in), w: (in, out) -> (M, out) f32 (bf16 MXU, fp32 accumulation)
        y = jax.lax.dot_general(x.astype(bf16), w.astype(bf16),
                                (((1,), (0,)), ((), ())),
                                preferred_element_type=f32)
        return y if b is None else y + b

    inv_e = 1.0 / float(E)

    def layernorm(x, g_ref, b_ref):
        # fused single-pass statistics: sum(x) and sum(x*x) computed together
        mu = jnp.sum(x, axis=-1, keepdims=True) * inv_e
        ex2 = jnp.sum(x * x, axis=-1, keepdims=True) * inv_e
        var = ex2 - mu * mu
        return (x - mu) * jax.lax.rsqrt(var + LN_EPS) * g_ref[...] + b_ref[...]

    tgt = tgt_ref[...]                                        # (B, Lq, E) bf16
    mem = mem_ref[...]                                        # (B, Lk, E) bf16
    q_in = (tgt + posq_ref[...]) if has_pos_q else tgt
    k_in = (mem + posk_ref[...]) if has_pos_k else mem

    # ---- MHA in-projections on the whole (B*L, E) slab (scale folded into wq/bq) ----
    q = matmul(q_in.reshape(B * Lq, E), wq_ref[...], bq_ref[...])   # (B*Lq, E) f32
    k = matmul(k_in.reshape(B * Lk, E), wk_ref[...], bk_ref[...])   # (B*Lk, E) f32
    v = matmul(mem.reshape(B * Lk, E), wv_ref[...], bv_ref[...])    # (B*Lk, E) f32

    # bf16 casts hoisted: exactly one cast pass per tensor
    q3 = q.reshape(B, Lq, E).astype(bf16)
    k3 = k.reshape(B, Lk, E).astype(bf16)
    v3 = v.reshape(B, Lk, E).astype(bf16)

    # ---- attention: fold heads into the leading batch dim (static lane slices plus a
    #      concat along an untiled axis -> no lane-dim reshape), then ONE batched
    #      score/softmax/context pass over all (batch, head).
    def split_heads(x3):
        return jnp.concatenate(
            [x3[:, :, h * hd:(h + 1) * hd] for h in range(nhead)], axis=0)

    qh = split_heads(q3)                                      # (nhead*B, Lq, hd) bf16
    kh = split_heads(k3)                                      # (nhead*B, Lk, hd) bf16
    vh = split_heads(v3)                                      # (nhead*B, Lk, hd) bf16

    s = jnp.einsum("bqd,bkd->bqk", qh, kh,
                   preferred_element_type=f32)                # (nhead*B, Lq, Lk) f32
    s = s - jnp.max(s, axis=-1, keepdims=True)
    p = jnp.exp(s)
    a = p * pl.reciprocal(jnp.sum(p, axis=-1, keepdims=True), approx=True)
    ctx = jnp.einsum("bqk,bkd->bqd", a.astype(bf16), vh,
                     preferred_element_type=f32).astype(bf16)  # (nhead*B, Lq, hd)

    # reassemble heads on the lane axis -> one full-depth (K = E) out-projection matmul
    ctx_full = jnp.concatenate(
        [ctx[h * B:(h + 1) * B] for h in range(nhead)], axis=-1)   # (B, Lq, E) bf16
    attn = matmul(ctx_full.reshape(B * Lq, E), wo_ref[...], bo_ref[...])

    # ---- residual + LayerNorm1 (dropout1 == identity) ----
    x = layernorm(tgt.reshape(B * Lq, E).astype(f32) + attn, g1_ref, be1_ref)

    # ---- FFN: linear1 -> ReLU -> linear2, K-tiled over dff so the f32 h1 slab stays
    #      bounded by (B*Lq, _DFF_CHUNK) even for production dff (v7x 64 MiB VMEM).
    ff = None
    for lo in range(0, dff, _DFF_CHUNK):
        hi = min(lo + _DFF_CHUNK, dff)
        h1 = jnp.maximum(matmul(x, w1_ref[:, lo:hi], b1_ref[:, lo:hi]), 0.0)
        part = matmul(h1, w2_ref[lo:hi, :])
        ff = part if ff is None else ff + part
    ff = ff + b2_ref[...]

    # ---- residual + LayerNorm2 (dropout2 == identity) ----
    y = layernorm(x + ff, g2_ref, be2_ref)
    out_ref[...] = y.reshape(B, Lq, E).astype(out_ref.dtype)


# ----------------------------------------------------------------------------------
# Per-generation sizing helpers
# ----------------------------------------------------------------------------------
def _vmem_budget_bytes():
    """Scoped-VMEM budget: ~75% of physical VMEM (v5e/v6e 128 MiB, v7x 64 MiB)."""
    try:
        cap = int(pltpu.get_tpu_info().vmem_capacity_bytes)
    except Exception:
        cap = 64 * 1024 * 1024          # conservative fallback = v7x
    return max(32 * 1024 * 1024, (cap * 3) // 4)


def _pick_batch_block(N, L, E, dff, nhead, vmem_budget):
    """Batch block: footprint-capped, and capped at ceil(N/2) so the batch grid always
    has >= 2 steps (v7x megacore sharding + cross-step DMA/compute overlap)."""
    if N <= 1:
        return 1
    per = 4 * (3 * L * E                    # q/k/v f32
               + 2 * nhead * L * L          # scores + probs f32
               + 4 * L * E                  # ctx / attn / LN slabs f32
               + L * min(dff, _DFF_CHUNK))  # FFN chunk f32
    per += 2 * 2 * 4 * L * E * 2            # double-buffered bf16 activation tiles
    cap = max(1, (vmem_budget // 2) // max(per, 1))
    return max(1, min(cap, -(-N // 2)))


# ----------------------------------------------------------------------------------
# Wrapper (single cross-attention block, batch-major bf16 in/out)
# ----------------------------------------------------------------------------------
def cross_attention_layer_bm(tgt_bm, mem_bm, params, *, nhead, pos_q_bm=None,
                             pos_k_bm=None, batch_block, vmem_limit_bytes):
    """tgt_bm: (Np, Lq, E) bf16, mem_bm: (Np, Lk, E) bf16 (batch-major, already padded).

    `params` must come from `prepare_layer_params`. Returns (Np, Lq, E) bf16.
    """
    Np, Lq, E = tgt_bm.shape
    Lk = mem_bm.shape[1]
    assert E % nhead == 0 and Np % batch_block == 0
    b_blk = batch_block
    n_blocks = Np // b_blk

    q_spec = pl.BlockSpec((b_blk, Lq, E), lambda b: (b, 0, 0))
    k_spec = pl.BlockSpec((b_blk, Lk, E), lambda b: (b, 0, 0))

    inputs = [tgt_bm, mem_bm]
    in_specs = [q_spec, k_spec]
    has_pos_q = pos_q_bm is not None
    has_pos_k = pos_k_bm is not None
    if has_pos_q:                       # zero positional embeddings are never DMA'd
        inputs.append(pos_q_bm)
        in_specs.append(q_spec)
    if has_pos_k:
        inputs.append(pos_k_bm)
        in_specs.append(k_spec)

    # Constant-index weight blocks.  pl.Buffered(1) single-buffering (halves weight
    # residency, matters under v7x's 64 MiB VMEM) was considered; omitted for lowering
    # robustness.
    def wspec(arr):
        return pl.BlockSpec(arr.shape, lambda b, _n=arr.ndim: (0,) * _n)

    weight_names = ("wq", "wk", "wv", "bq", "bk", "bv", "wo", "bo",
                    "w1", "b1", "w2", "b2", "g1", "be1", "g2", "be2")
    weights = [params[name] for name in weight_names]
    inputs += weights
    in_specs += [wspec(w) for w in weights]

    # bf16 batch-major output: halves HBM writeback and chains directly into the next
    # layer with zero transpose/cast.  E >= 128 keeps the store lane-dense.
    # TODO(synk): for E < 128, fold Lq*E onto the lane axis for unmasked stores.
    out_shape = jax.ShapeDtypeStruct((Np, Lq, E), jnp.bfloat16)
    out_spec = pl.BlockSpec((b_blk, Lq, E), lambda b: (b, 0, 0))

    kernel = functools.partial(_cfa_layer_kernel, nhead, has_pos_q, has_pos_k)

    return pl.pallas_call(
        kernel,
        out_shape=out_shape,
        grid_spec=pltpu.PrefetchScalarGridSpec(
            num_scalar_prefetch=0,
            grid=(n_blocks,),
            in_specs=in_specs,
            out_specs=out_spec,
        ),
        compiler_params=pltpu.CompilerParams(
            # batch blocks are independent -> shard across v7x's two TensorCores
            dimension_semantics=("parallel",),
            vmem_limit_bytes=vmem_limit_bytes,
        ),
    )(*inputs)


def prepare_layer_params(p, nhead):
    """PyTorch-layout fp32 params -> kernel layout.

    Weights are transposed once to (in_features, out_features) and cast to bf16.
    The 1/sqrt(head_dim) attention scale is folded into wq/bq (no per-step VALU
    multiply over the score tensor).  Biases / LayerNorm params stay fp32 (1, features).
    """
    def w(x):
        return jnp.asarray(x, jnp.float32).T.astype(jnp.bfloat16)

    def b(x):
        return jnp.asarray(x, jnp.float32).reshape(1, -1)

    e = int(jnp.asarray(p["wq"]).shape[0])
    hd = e // nhead
    scale = 1.0 / float(hd) ** 0.5
    return {
        "wq": (jnp.asarray(p["wq"], jnp.float32).T * scale).astype(jnp.bfloat16),
        "bq": b(p["bq"]) * scale,
        "wk": w(p["wk"]), "bk": b(p["bk"]),
        "wv": w(p["wv"]), "bv": b(p["bv"]),
        "wo": w(p["wo"]), "bo": b(p["bo"]),
        "w1": w(p["w1"]), "b1": b(p["b1"]),
        "w2": w(p["w2"]), "b2": b(p["b2"]),
        "g1": b(p["g1"]), "be1": b(p["be1"]),
        "g2": b(p["g2"]), "be2": b(p["be2"]),
    }


# ----------------------------------------------------------------------------------
# Encoder composition (mirrors Encoder.forward)
# ----------------------------------------------------------------------------------
def encoder_forward(src1, src2, params, *, nhead,
                    src1_mask=None, src2_mask=None,
                    src1_key_padding_mask=None, src2_key_padding_mask=None,
                    pos_src1=None, pos_src2=None, query_embed=None,
                    batch_block=None):
    # TODO(synk): attention / key-padding masks are None in this forward; not implemented.
    if any(m is not None for m in (src1_mask, src2_mask,
                                   src1_key_padding_mask, src2_key_padding_mask)):
        raise NotImplementedError("masks are not supported")

    L1, N, E = src1.shape
    L2 = src2.shape[0]
    dff = params["query"]["w1"].shape[1]

    vmem_budget = _vmem_budget_bytes()
    b_blk = batch_block or _pick_batch_block(N, max(L1, L2), E, dff, nhead, vmem_budget)
    n_pad = -(-N // b_blk) * b_blk

    # Batch-major bf16 layout for the whole stack: transpose / cast / pad exactly once.
    def to_bm(x):
        xb = jnp.transpose(x, (1, 0, 2)).astype(jnp.bfloat16)
        if n_pad != N:
            xb = jnp.pad(xb, ((0, n_pad - N), (0, 0), (0, 0)))
        return xb

    s1, s2 = to_bm(src1), to_bm(src2)
    qe = to_bm(query_embed)
    p1 = to_bm(pos_src1) if pos_src1 is not None else None
    p2 = to_bm(pos_src2) if pos_src2 is not None else None

    layer = functools.partial(cross_attention_layer_bm, nhead=nhead,
                              batch_block=b_blk, vmem_limit_bytes=vmem_budget)

    # query_layer(output1, query_embed, pos_src1=pos_src1)
    out1 = layer(s1, qe, params["query"], pos_q_bm=p1, pos_k_bm=None)
    out2 = s2
    # feature-fusion layers: cross-attend output1 <-> output2 (pos_src1=query_embed)
    for lp in params["layers"]:
        new1 = layer(out1, out2, lp["s1"], pos_q_bm=qe, pos_k_bm=p2)
        new2 = layer(out2, out1, lp["s2"], pos_q_bm=p2, pos_k_bm=qe)
        out1, out2 = new1, new2

    def from_bm(x):
        return jnp.transpose(x[:N], (1, 0, 2)).astype(jnp.float32)

    return from_bm(out1), from_bm(out2)


# ----------------------------------------------------------------------------------
# Pure-JAX reference (PyTorch-style (L, N, E) interface; bf16 matmuls, f32 acc/LN)
# ----------------------------------------------------------------------------------
def _reference_layer(tgt, memory, p, *, nhead, pos_q=None, pos_k=None):
    Lq, N, E = tgt.shape
    Lk = memory.shape[0]
    hd = E // nhead
    scale = 1.0 / float(hd) ** 0.5
    f32, bf16 = jnp.float32, jnp.bfloat16

    def lin(x, w, b=None):
        y = jnp.einsum("lni,oi->lno", x.astype(bf16), w.astype(bf16),
                       preferred_element_type=f32)
        if b is not None:
            y = y + b.reshape(1, 1, -1).astype(f32)
        return y

    def layernorm(x, g, bb):
        mu = x.mean(-1, keepdims=True)
        var = ((x - mu) ** 2).mean(-1, keepdims=True)
        return (x - mu) * jax.lax.rsqrt(var + LN_EPS) * g.reshape(1, 1, -1) \
            + bb.reshape(1, 1, -1)

    tgt_bf = tgt.astype(bf16)
    mem_bf = memory.astype(bf16)
    q_in = (tgt_bf + pos_q.astype(bf16)) if pos_q is not None else tgt_bf
    k_in = (mem_bf + pos_k.astype(bf16)) if pos_k is not None else mem_bf

    q = lin(q_in, p["wq"], p["bq"]).reshape(Lq, N, nhead, hd).astype(bf16)
    k = lin(k_in, p["wk"], p["bk"]).reshape(Lk, N, nhead, hd).astype(bf16)
    v = lin(mem_bf, p["wv"], p["bv"]).reshape(Lk, N, nhead, hd).astype(bf16)

    s = jnp.einsum("qnhd,knhd->nhqk", q, k, preferred_element_type=f32) * scale
    a = jax.nn.softmax(s, axis=-1)
    ctx = jnp.einsum("nhqk,knhd->qnhd", a.astype(bf16), v,
                     preferred_element_type=f32).reshape(Lq, N, E)
    attn = lin(ctx, p["wo"], p["bo"])

    x = layernorm(tgt_bf.astype(f32) + attn, p["g1"], p["be1"])
    h1 = jnp.maximum(lin(x, p["w1"], p["b1"]), 0.0)
    ff = lin(h1, p["w2"], p["b2"])
    return layernorm(x + ff, p["g2"], p["be2"])


def _reference_encoder(src1, src2, params_pt, *, nhead,
                       pos_src1=None, pos_src2=None, query_embed=None):
    out1, out2 = src1, src2
    out1 = _reference_layer(out1, query_embed, params_pt["query"], nhead=nhead,
                            pos_q=pos_src1, pos_k=None)
    for lp in params_pt["layers"]:
        new1 = _reference_layer(out1, out2, lp["s1"], nhead=nhead,
                                pos_q=query_embed, pos_k=pos_src2)
        new2 = _reference_layer(out2, out1, lp["s2"], nhead=nhead,
                                pos_q=pos_src2, pos_k=query_embed)
        out1, out2 = new1, new2
    return out1, out2


# ----------------------------------------------------------------------------------
# Demo / correctness check
# ----------------------------------------------------------------------------------
if __name__ == "__main__":
    # E = 128 keeps every load/store lane-dense (production CFN d_model >= 128).
    d_model, nhead, dff = 128, 4, 256
    num_layers = 2
    L1, L2, N = 8, 16, 2

    key = jax.random.PRNGKey(0)
    k_params, k_data = jax.random.split(key)

    def make_layer_params(k):
        ks = jax.random.split(k, 12)

        def rn(kk, shape, s=0.1):
            return jax.random.normal(kk, shape, jnp.float32) * s

        return {
            "wq": rn(ks[0], (d_model, d_model)), "bq": rn(ks[1], (d_model,)),
            "wk": rn(ks[2], (d_model, d_model)), "bk": rn(ks[3], (d_model,)),
            "wv": rn(ks[4], (d_model, d_model)), "bv": rn(ks[5], (d_model,)),
            "wo": rn(ks[6], (d_model, d_model)), "bo": rn(ks[7], (d_model,)),
            "w1": rn(ks[8], (dff, d_model)),     "b1": rn(ks[9], (dff,)),
            "w2": rn(ks[10], (d_model, dff)),    "b2": rn(ks[11], (d_model,)),
            "g1": jnp.ones((d_model,), jnp.float32),
            "be1": jnp.zeros((d_model,), jnp.float32),
            "g2": jnp.ones((d_model,), jnp.float32),
            "be2": jnp.zeros((d_model,), jnp.float32),
        }

    pk = jax.random.split(k_params, 1 + 2 * num_layers)
    params_pt = {
        "query": make_layer_params(pk[0]),
        "layers": [{"s1": make_layer_params(pk[1 + 2 * i]),
                    "s2": make_layer_params(pk[2 + 2 * i])}
                   for i in range(num_layers)],
    }
    params_kernel = {
        "query": prepare_layer_params(params_pt["query"], nhead),
        "layers": [{"s1": prepare_layer_params(lp["s1"], nhead),
                    "s2": prepare_layer_params(lp["s2"], nhead)}
                   for lp in params_pt["layers"]],
    }

    dk = jax.random.split(k_data, 4)
    src1 = jax.random.normal(dk[0], (L1, N, d_model), jnp.float32)
    src2 = jax.random.normal(dk[1], (L2, N, d_model), jnp.float32)
    query_embed = jax.random.normal(dk[2], (L1, N, d_model), jnp.float32) * 0.5
    pos_src2 = jax.random.normal(dk[3], (L2, N, d_model), jnp.float32) * 0.5
    pos_src1 = jax.random.normal(jax.random.PRNGKey(1), (L1, N, d_model),
                                 jnp.float32) * 0.5

    out1, out2 = encoder_forward(src1, src2, params_kernel, nhead=nhead,
                                 pos_src1=pos_src1, pos_src2=pos_src2,
                                 query_embed=query_embed)
    out1, out2 = jax.block_until_ready((out1, out2))

    ref1, ref2 = _reference_encoder(src1, src2, params_pt, nhead=nhead,
                                    pos_src1=pos_src1, pos_src2=pos_src2,
                                    query_embed=query_embed)

    np.testing.assert_allclose(np.asarray(out1), np.asarray(ref1, dtype=np.float32),
                               atol=3e-2, rtol=3e-2)
    np.testing.assert_allclose(np.asarray(out2), np.asarray(ref2, dtype=np.float32),
                               atol=3e-2, rtol=3e-2)

    print("KERNEL_OK")
</pallas_src>

<mosaic_0001>
module attributes {stable_mosaic.version = 11 : i64} {
  func.func @_cfa_layer_kernel(%arg0: i32, %arg1: memref<1x8x128xbf16, #tpu.memory_space<vmem>>, %arg2: memref<1x8x128xbf16, #tpu.memory_space<vmem>>, %arg3: memref<1x8x128xbf16, #tpu.memory_space<vmem>>, %arg4: memref<128x128xbf16, #tpu.memory_space<vmem>>, %arg5: memref<128x128xbf16, #tpu.memory_space<vmem>>, %arg6: memref<128x128xbf16, #tpu.memory_space<vmem>>, %arg7: memref<1x128xf32, #tpu.memory_space<vmem>>, %arg8: memref<1x128xf32, #tpu.memory_space<vmem>>, %arg9: memref<1x128xf32, #tpu.memory_space<vmem>>, %arg10: memref<128x128xbf16, #tpu.memory_space<vmem>>, %arg11: memref<1x128xf32, #tpu.memory_space<vmem>>, %arg12: memref<128x256xbf16, #tpu.memory_space<vmem>>, %arg13: memref<1x256xf32, #tpu.memory_space<vmem>>, %arg14: memref<256x128xbf16, #tpu.memory_space<vmem>>, %arg15: memref<1x128xf32, #tpu.memory_space<vmem>>, %arg16: memref<1x128xf32, #tpu.memory_space<vmem>>, %arg17: memref<1x128xf32, #tpu.memory_space<vmem>>, %arg18: memref<1x128xf32, #tpu.memory_space<vmem>>, %arg19: memref<1x128xf32, #tpu.memory_space<vmem>>, %arg20: memref<1x8x128xbf16, #tpu.memory_space<vmem>>) attributes {dimension_semantics = [#tpu.dimension_semantics<parallel>], iteration_bounds = array<i64: 2>, scalar_prefetch = 0 : i64, scratch_operands = 0 : i64, tpu.core_type = #tpu.core_type<tc>, window_params = [{transform_indices = @transform_0, window_bounds = array<i64: 1, 8, 128>}, {transform_indices = @transform_1, window_bounds = array<i64: 1, 8, 128>}, {transform_indices = @transform_2, window_bounds = array<i64: 1, 8, 128>}, {pipeline_mode = #tpu.pipeline_mode<synchronous>, transform_indices = @transform_3, window_bounds = array<i64: 128, 128>}, {pipeline_mode = #tpu.pipeline_mode<synchronous>, transform_indices = @transform_4, window_bounds = array<i64: 128, 128>}, {pipeline_mode = #tpu.pipeline_mode<synchronous>, transform_indices = @transform_5, window_bounds = array<i64: 128, 128>}, {pipeline_mode = #tpu.pipeline_mode<synchronous>, transform_indices = @transform_6, window_bounds = array<i64: 1, 128>}, {pipeline_mode = #tpu.pipeline_mode<synchronous>, transform_indices = @transform_7, window_bounds = array<i64: 1, 128>}, {pipeline_mode = #tpu.pipeline_mode<synchronous>, transform_indices = @transform_8, window_bounds = array<i64: 1, 128>}, {pipeline_mode = #tpu.pipeline_mode<synchronous>, transform_indices = @transform_9, window_bounds = array<i64: 128, 128>}, {pipeline_mode = #tpu.pipeline_mode<synchronous>, transform_indices = @transform_10, window_bounds = array<i64: 1, 128>}, {pipeline_mode = #tpu.pipeline_mode<synchronous>, transform_indices = @transform_11, window_bounds = array<i64: 128, 256>}, {pipeline_mode = #tpu.pipeline_mode<synchronous>, transform_indices = @transform_12, window_bounds = array<i64: 1, 256>}, {pipeline_mode = #tpu.pipeline_mode<synchronous>, transform_indices = @transform_13, window_bounds = array<i64: 256, 128>}, {pipeline_mode = #tpu.pipeline_mode<synchronous>, transform_indices = @transform_14, window_bounds = array<i64: 1, 128>}, {pipeline_mode = #tpu.pipeline_mode<synchronous>, transform_indices = @transform_15, window_bounds = array<i64: 1, 128>}, {pipeline_mode = #tpu.pipeline_mode<synchronous>, transform_indices = @transform_16, window_bounds = array<i64: 1, 128>}, {pipeline_mode = #tpu.pipeline_mode<synchronous>, transform_indices = @transform_17, window_bounds = array<i64: 1, 128>}, {pipeline_mode = #tpu.pipeline_mode<synchronous>, transform_indices = @transform_18, window_bounds = array<i64: 1, 128>}, {transform_indices = @transform_19, window_bounds = array<i64: 1, 8, 128>}]} {
    %c0 = arith.constant 0 : index
    %c0_0 = arith.constant 0 : index
    %c0_1 = arith.constant 0 : index
    %0 = vector.load %arg1[%c0, %c0_0, %c0_1] : memref<1x8x128xbf16, #tpu.memory_space<vmem>>, vector<1x8x128xbf16>
    %c0_2 = arith.constant 0 : index
    %c0_3 = arith.constant 0 : index
    %c0_4 = arith.constant 0 : index
    %1 = vector.load %arg2[%c0_2, %c0_3, %c0_4] : memref<1x8x128xbf16, #tpu.memory_space<vmem>>, vector<1x8x128xbf16>
    %c0_5 = arith.constant 0 : index
    %c0_6 = arith.constant 0 : index
    %c0_7 = arith.constant 0 : index
    %2 = vector.load %arg3[%c0_5, %c0_6, %c0_7] : memref<1x8x128xbf16, #tpu.memory_space<vmem>>, vector<1x8x128xbf16>
    %3 = arith.addf %0, %2 : vector<1x8x128xbf16>
    %4 = vector.shape_cast %3 : vector<1x8x128xbf16> to vector<8x128xbf16>
    %c0_8 = arith.constant 0 : index
    %c0_9 = arith.constant 0 : index
    %5 = vector.load %arg4[%c0_8, %c0_9] : memref<128x128xbf16, #tpu.memory_space<vmem>>, vector<128x128xbf16>
    %c0_10 = arith.constant 0 : index
    %c0_11 = arith.constant 0 : index
    %6 = vector.load %arg7[%c0_10, %c0_11] : memref<1x128xf32, #tpu.memory_space<vmem>>, vector<1x128xf32>
    %cst = arith.constant dense<0.000000e+00> : vector<8x128xf32>
    %7 = tpu.matmul %4, %5, %cst {dimension_numbers = #tpu.dot_dimension_numbers<[1], [0], [0], [1], [0, 0, 1, 1], [], []>} : vector<8x128xbf16>, vector<128x128xbf16>, vector<8x128xf32> -> vector<8x128xf32>
    %8 = vector.broadcast %6 : vector<1x128xf32> to vector<8x128xf32>
    %9 = arith.addf %7, %8 : vector<8x128xf32>
    %10 = vector.shape_cast %1 : vector<1x8x128xbf16> to vector<8x128xbf16>
    %c0_12 = arith.constant 0 : index
    %c0_13 = arith.constant 0 : index
    %11 = vector.load %arg5[%c0_12, %c0_13] : memref<128x128xbf16, #tpu.memory_space<vmem>>, vector<128x128xbf16>
    %c0_14 = arith.constant 0 : index
    %c0_15 = arith.constant 0 : index
    %12 = vector.load %arg8[%c0_14, %c0_15] : memref<1x128xf32, #tpu.memory_space<vmem>>, vector<1x128xf32>
    %cst_16 = arith.constant dense<0.000000e+00> : vector<8x128xf32>
    %13 = tpu.matmul %10, %11, %cst_16 {dimension_numbers = #tpu.dot_dimension_numbers<[1], [0], [0], [1], [0, 0, 1, 1], [], []>} : vector<8x128xbf16>, vector<128x128xbf16>, vector<8x128xf32> -> vector<8x128xf32>
    %14 = vector.broadcast %12 : vector<1x128xf32> to vector<8x128xf32>
    %15 = arith.addf %13, %14 : vector<8x128xf32>
    %16 = vector.shape_cast %1 : vector<1x8x128xbf16> to vector<8x128xbf16>
    %c0_17 = arith.constant 0 : index
    %c0_18 = arith.constant 0 : index
    %17 = vector.load %arg6[%c0_17, %c0_18] : memref<128x128xbf16, #tpu.memory_space<vmem>>, vector<128x128xbf16>
    %c0_19 = arith.constant 0 : index
    %c0_20 = arith.constant 0 : index
    %18 = vector.load %arg9[%c0_19, %c0_20] : memref<1x128xf32, #tpu.memory_space<vmem>>, vector<1x128xf32>
    %cst_21 = arith.constant dense<0.000000e+00> : vector<8x128xf32>
    %19 = tpu.matmul %16, %17, %cst_21 {dimension_numbers = #tpu.dot_dimension_numbers<[1], [0], [0], [1], [0, 0, 1, 1], [], []>} : vector<8x128xbf16>, vector<128x128xbf16>, vector<8x128xf32> -> vector<8x128xf32>
    %20 = vector.broadcast %18 : vector<1x128xf32> to vector<8x128xf32>
    %21 = arith.addf %19, %20 : vector<8x128xf32>
    %22 = vector.shape_cast %9 : vector<8x128xf32> to vector<1x8x128xf32>
    %23 = arith.truncf %22 : vector<1x8x128xf32> to vector<1x8x128xbf16>
    %24 = vector.shape_cast %15 : vector<8x128xf32> to vector<1x8x128xf32>
    %25 = arith.truncf %24 : vector<1x8x128xf32> to vector<1x8x128xbf16>
    %26 = vector.shape_cast %21 : vector<8x128xf32> to vector<1x8x128xf32>
    %27 = arith.truncf %26 : vector<1x8x128xf32> to vector<1x8x128xbf16>
    %28 = vector.extract_strided_slice %23 {offsets = [0, 0, 0], sizes = [1, 8, 32], strides = [1, 1, 1]} : vector<1x8x128xbf16> to vector<1x8x32xbf16>
    %29 = vector.extract_strided_slice %23 {offsets = [0, 0, 32], sizes = [1, 8, 32], strides = [1, 1, 1]} : vector<1x8x128xbf16> to vector<1x8x32xbf16>
    %30 = vector.extract_strided_slice %23 {offsets = [0, 0, 64], sizes = [1, 8, 32], strides = [1, 1, 1]} : vector<1x8x128xbf16> to vector<1x8x32xbf16>
    %31 = vector.extract_strided_slice %23 {offsets = [0, 0, 96], sizes = [1, 8, 32], strides = [1, 1, 1]} : vector<1x8x128xbf16> to vector<1x8x32xbf16>
    %32 = tpu.concatenate %28, %29, %30, %31 in 0 : vector<1x8x32xbf16>, vector<1x8x32xbf16>, vector<1x8x32xbf16>, vector<1x8x32xbf16> -> vector<4x8x32xbf16>
    %33 = vector.extract_strided_slice %25 {offsets = [0, 0, 0], sizes = [1, 8, 32], strides = [1, 1, 1]} : vector<1x8x128xbf16> to vector<1x8x32xbf16>
    %34 = vector.extract_strided_slice %25 {offsets = [0, 0, 32], sizes = [1, 8, 32], strides = [1, 1, 1]} : vector<1x8x128xbf16> to vector<1x8x32xbf16>
    %35 = vector.extract_strided_slice %25 {offsets = [0, 0, 64], sizes = [1, 8, 32], strides = [1, 1, 1]} : vector<1x8x128xbf16> to vector<1x8x32xbf16>
    %36 = vector.extract_strided_slice %25 {offsets = [0, 0, 96], sizes = [1, 8, 32], strides = [1, 1, 1]} : vector<1x8x128xbf16> to vector<1x8x32xbf16>
    %37 = tpu.concatenate %33, %34, %35, %36 in 0 : vector<1x8x32xbf16>, vector<1x8x32xbf16>, vector<1x8x32xbf16>, vector<1x8x32xbf16> -> vector<4x8x32xbf16>
    %38 = vector.extract_strided_slice %27 {offsets = [0, 0, 0], sizes = [1, 8, 32], strides = [1, 1, 1]} : vector<1x8x128xbf16> to vector<1x8x32xbf16>
    %39 = vector.extract_strided_slice %27 {offsets = [0, 0, 32], sizes = [1, 8, 32], strides = [1, 1, 1]} : vector<1x8x128xbf16> to vector<1x8x32xbf16>
    %40 = vector.extract_strided_slice %27 {offsets = [0, 0, 64], sizes = [1, 8, 32], strides = [1, 1, 1]} : vector<1x8x128xbf16> to vector<1x8x32xbf16>
    %41 = vector.extract_strided_slice %27 {offsets = [0, 0, 96], sizes = [1, 8, 32], strides = [1, 1, 1]} : vector<1x8x128xbf16> to vector<1x8x32xbf16>
    %42 = tpu.concatenate %38, %39, %40, %41 in 0 : vector<1x8x32xbf16>, vector<1x8x32xbf16>, vector<1x8x32xbf16>, vector<1x8x32xbf16> -> vector<4x8x32xbf16>
    "tpu.trace_start"() <{level = 10 : i32, message = "bqd,bkd->bqk"}> : () -> ()
    %cst_22 = arith.constant dense<0.000000e+00> : vector<4x8x8xf32>
    %43 = tpu.matmul %32, %37, %cst_22 {dimension_numbers = #tpu.dot_dimension_numbers<[2], [2], [1], [1], [0, 0, 0, 1, 1, 1], [0], [0]>} : vector<4x8x32xbf16>, vector<4x8x32xbf16>, vector<4x8x8xf32> -> vector<4x8x8xf32>
    "tpu.trace_stop"() : () -> ()
    %cst_23 = arith.constant dense<0xFF800000> : vector<4x8xf32>
    %44 = vector.multi_reduction <maximumf>, %43, %cst_23 [2] : vector<4x8x8xf32> to vector<4x8xf32>
    %45 = vector.shape_cast %44 : vector<4x8xf32> to vector<4x8x1xf32>
    %46 = vector.broadcast %45 : vector<4x8x1xf32> to vector<4x8x8xf32>
    %47 = arith.subf %43, %46 : vector<4x8x8xf32>
    %48 = math.exp %47 : vector<4x8x8xf32>
    %cst_24 = arith.constant dense<0.000000e+00> : vector<4x8xf32>
    %49 = vector.multi_reduction <add>, %48, %cst_24 [2] : vector<4x8x8xf32> to vector<4x8xf32>
    %50 = vector.shape_cast %49 : vector<4x8xf32> to vector<4x8x1xf32>
    %51 = tpu.reciprocal %50 {approx = true} : vector<4x8x1xf32> -> vector<4x8x1xf32>
    %52 = vector.broadcast %51 : vector<4x8x1xf32> to vector<4x8x8xf32>
    %53 = arith.mulf %48, %52 : vector<4x8x8xf32>
    %54 = arith.truncf %53 : vector<4x8x8xf32> to vector<4x8x8xbf16>
    "tpu.trace_start"() <{level = 10 : i32, message = "bqk,bkd->bqd"}> : () -> ()
    %cst_25 = arith.constant dense<0.000000e+00> : vector<4x8x32xf32>
    %55 = tpu.matmul %54, %42, %cst_25 {dimension_numbers = #tpu.dot_dimension_numbers<[2], [1], [1], [2], [0, 0, 0, 1, 1, 2], [0], [0]>} : vector<4x8x8xbf16>, vector<4x8x32xbf16>, vector<4x8x32xf32> -> vector<4x8x32xf32>
    "tpu.trace_stop"() : () -> ()
    %56 = arith.truncf %55 : vector<4x8x32xf32> to vector<4x8x32xbf16>
    %57 = vector.extract_strided_slice %56 {offsets = [0, 0, 0], sizes = [1, 8, 32], strides = [1, 1, 1]} : vector<4x8x32xbf16> to vector<1x8x32xbf16>
    %58 = vector.extract_strided_slice %56 {offsets = [1, 0, 0], sizes = [1, 8, 32], strides = [1, 1, 1]} : vector<4x8x32xbf16> to vector<1x8x32xbf16>
    %59 = vector.extract_strided_slice %56 {offsets = [2, 0, 0], sizes = [1, 8, 32], strides = [1, 1, 1]} : vector<4x8x32xbf16> to vector<1x8x32xbf16>
    %60 = vector.extract_strided_slice %56 {offsets = [3, 0, 0], sizes = [1, 8, 32], strides = [1, 1, 1]} : vector<4x8x32xbf16> to vector<1x8x32xbf16>
    %61 = tpu.concatenate %57, %58, %59, %60 in 2 : vector<1x8x32xbf16>, vector<1x8x32xbf16>, vector<1x8x32xbf16>, vector<1x8x32xbf16> -> vector<1x8x128xbf16>
    %62 = vector.shape_cast %61 : vector<1x8x128xbf16> to vector<8x128xbf16>
    %c0_26 = arith.constant 0 : index
    %c0_27 = arith.constant 0 : index
    %63 = vector.load %arg10[%c0_26, %c0_27] : memref<128x128xbf16, #tpu.memory_space<vmem>>, vector<128x128xbf16>
    %c0_28 = arith.constant 0 : index
    %c0_29 = arith.constant 0 : index
    %64 = vector.load %arg11[%c0_28, %c0_29] : memref<1x128xf32, #tpu.memory_space<vmem>>, vector<1x128xf32>
    %cst_30 = arith.constant dense<0.000000e+00> : vector<8x128xf32>
    %65 = tpu.matmul %62, %63, %cst_30 {dimension_numbers = #tpu.dot_dimension_numbers<[1], [0], [0], [1], [0, 0, 1, 1], [], []>} : vector<8x128xbf16>, vector<128x128xbf16>, vector<8x128xf32> -> vector<8x128xf32>
    %66 = vector.broadcast %64 : vector<1x128xf32> to vector<8x128xf32>
    %67 = arith.addf %65, %66 : vector<8x128xf32>
    %68 = vector.shape_cast %0 : vector<1x8x128xbf16> to vector<8x128xbf16>
    %69 = arith.extf %68 : vector<8x128xbf16> to vector<8x128xf32>
    %70 = arith.addf %69, %67 : vector<8x128xf32>
    %cst_31 = arith.constant dense<0.000000e+00> : vector<8xf32>
    %71 = vector.multi_reduction <add>, %70, %cst_31 [1] : vector<8x128xf32> to vector<8xf32>
    %72 = vector.shape_cast %71 : vector<8xf32> to vector<8x1xf32>
    %cst_32 = arith.constant 7.812500e-03 : f32
    %73 = vector.broadcast %cst_32 : f32 to vector<8x1xf32>
    %74 = arith.mulf %72, %73 : vector<8x1xf32>
    %75 = arith.mulf %70, %70 : vector<8x128xf32>
    %cst_33 = arith.constant dense<0.000000e+00> : vector<8xf32>
    %76 = vector.multi_reduction <add>, %75, %cst_33 [1] : vector<8x128xf32> to vector<8xf32>
    %77 = vector.shape_cast %76 : vector<8xf32> to vector<8x1xf32>
    %cst_34 = arith.constant 7.812500e-03 : f32
    %78 = vector.broadcast %cst_34 : f32 to vector<8x1xf32>
    %79 = arith.mulf %77, %78 : vector<8x1xf32>
    %80 = arith.mulf %74, %74 : vector<8x1xf32>
    %81 = arith.subf %79, %80 : vector<8x1xf32>
    %82 = vector.broadcast %74 : vector<8x1xf32> to vector<8x128xf32>
    %83 = arith.subf %70, %82 : vector<8x128xf32>
    %cst_35 = arith.constant 9.99999974E-6 : f32
    %84 = vector.broadcast %cst_35 : f32 to vector<8x1xf32>
    %85 = arith.addf %81, %84 : vector<8x1xf32>
    %86 = math.rsqrt %85 : vector<8x1xf32>
    %87 = vector.broadcast %86 : vector<8x1xf32> to vector<8x128xf32>
    %88 = arith.mulf %83, %87 : vector<8x128xf32>
    %c0_36 = arith.constant 0 : index
    %c0_37 = arith.constant 0 : index
    %89 = vector.load %arg16[%c0_36, %c0_37] : memref<1x128xf32, #tpu.memory_space<vmem>>, vector<1x128xf32>
    %90 = vector.broadcast %89 : vector<1x128xf32> to vector<8x128xf32>
    %91 = arith.mulf %88, %90 : vector<8x128xf32>
    %c0_38 = arith.constant 0 : index
    %c0_39 = arith.constant 0 : index
    %92 = vector.load %arg17[%c0_38, %c0_39] : memref<1x128xf32, #tpu.memory_space<vmem>>, vector<1x128xf32>
    %93 = vector.broadcast %92 : vector<1x128xf32> to vector<8x128xf32>
    %94 = arith.addf %91, %93 : vector<8x128xf32>
    %c0_40 = arith.constant 0 : index
    %c0_41 = arith.constant 0 : index
    %95 = vector.load %arg12[%c0_40, %c0_41] : memref<128x256xbf16, #tpu.memory_space<vmem>>, vector<128x256xbf16>
    %c0_42 = arith.constant 0 : index
    %c0_43 = arith.constant 0 : index
    %96 = vector.load %arg13[%c0_42, %c0_43] : memref<1x256xf32, #tpu.memory_space<vmem>>, vector<1x256xf32>
    %97 = arith.truncf %94 : vector<8x128xf32> to vector<8x128xbf16>
    %cst_44 = arith.constant dense<0.000000e+00> : vector<8x256xf32>
    %98 = tpu.matmul %97, %95, %cst_44 {dimension_numbers = #tpu.dot_dimension_numbers<[1], [0], [0], [1], [0, 0, 1, 1], [], []>} : vector<8x128xbf16>, vector<128x256xbf16>, vector<8x256xf32> -> vector<8x256xf32>
    %99 = vector.broadcast %96 : vector<1x256xf32> to vector<8x256xf32>
    %100 = arith.addf %98, %99 : vector<8x256xf32>
    %cst_45 = arith.constant 0.000000e+00 : f32
    %101 = vector.broadcast %cst_45 : f32 to vector<8x256xf32>
    %102 = arith.maximumf %100, %101 : vector<8x256xf32>
    %c0_46 = arith.constant 0 : index
    %c0_47 = arith.constant 0 : index
    %103 = vector.load %arg14[%c0_46, %c0_47] : memref<256x128xbf16, #tpu.memory_space<vmem>>, vector<256x128xbf16>
    %104 = arith.truncf %102 : vector<8x256xf32> to vector<8x256xbf16>
    %cst_48 = arith.constant dense<0.000000e+00> : vector<8x128xf32>
    %105 = tpu.matmul %104, %103, %cst_48 {dimension_numbers = #tpu.dot_dimension_numbers<[1], [0], [0], [1], [0, 0, 1, 1], [], []>} : vector<8x256xbf16>, vector<256x128xbf16>, vector<8x128xf32> -> vector<8x128xf32>
    %c0_49 = arith.constant 0 : index
    %c0_50 = arith.constant 0 : index
    %106 = vector.load %arg15[%c0_49, %c0_50] : memref<1x128xf32, #tpu.memory_space<vmem>>, vector<1x128xf32>
    %107 = vector.broadcast %106 : vector<1x128xf32> to vector<8x128xf32>
    %108 = arith.addf %105, %107 : vector<8x128xf32>
    %109 = arith.addf %94, %108 : vector<8x128xf32>
    %cst_51 = arith.constant dense<0.000000e+00> : vector<8xf32>
    %110 = vector.multi_reduction <add>, %109, %cst_51 [1] : vector<8x128xf32> to vector<8xf32>
    %111 = vector.shape_cast %110 : vector<8xf32> to vector<8x1xf32>
    %cst_52 = arith.constant 7.812500e-03 : f32
    %112 = vector.broadcast %cst_52 : f32 to vector<8x1xf32>
    %113 = arith.mulf %111, %112 : vector<8x1xf32>
    %114 = arith.mulf %109, %109 : vector<8x128xf32>
    %cst_53 = arith.constant dense<0.000000e+00> : vector<8xf32>
    %115 = vector.multi_reduction <add>, %114, %cst_53 [1] : vector<8x128xf32> to vector<8xf32>
    %116 = vector.shape_cast %115 : vector<8xf32> to vector<8x1xf32>
    %cst_54 = arith.constant 7.812500e-03 : f32
    %117 = vector.broadcast %cst_54 : f32 to vector<8x1xf32>
    %118 = arith.mulf %116, %117 : vector<8x1xf32>
    %119 = arith.mulf %113, %113 : vector<8x1xf32>
    %120 = arith.subf %118, %119 : vector<8x1xf32>
    %121 = vector.broadcast %113 : vector<8x1xf32> to vector<8x128xf32>
    %122 = arith.subf %109, %121 : vector<8x128xf32>
    %cst_55 = arith.constant 9.99999974E-6 : f32
    %123 = vector.broadcast %cst_55 : f32 to vector<8x1xf32>
    %124 = arith.addf %120, %123 : vector<8x1xf32>
    %125 = math.rsqrt %124 : vector<8x1xf32>
    %126 = vector.broadcast %125 : vector<8x1xf32> to vector<8x128xf32>
    %127 = arith.mulf %122, %126 : vector<8x128xf32>
    %c0_56 = arith.constant 0 : index
    %c0_57 = arith.constant 0 : index
    %128 = vector.load %arg18[%c0_56, %c0_57] : memref<1x128xf32, #tpu.memory_space<vmem>>, vector<1x128xf32>
    %129 = vector.broadcast %128 : vector<1x128xf32> to vector<8x128xf32>
    %130 = arith.mulf %127, %129 : vector<8x128xf32>
    %c0_58 = arith.constant 0 : index
    %c0_59 = arith.constant 0 : index
    %131 = vector.load %arg19[%c0_58, %c0_59] : memref<1x128xf32, #tpu.memory_space<vmem>>, vector<1x128xf32>
    %132 = vector.broadcast %131 : vector<1x128xf32> to vector<8x128xf32>
    %133 = arith.addf %130, %132 : vector<8x128xf32>
    %134 = vector.shape_cast %133 : vector<8x128xf32> to vector<1x8x128xf32>
    %135 = arith.truncf %134 : vector<1x8x128xf32> to vector<1x8x128xbf16>
    %c0_60 = arith.constant 0 : index
    %c0_61 = arith.constant 0 : index
    %c0_62 = arith.constant 0 : index
    %136 = vector.load %arg20[%c0_60, %c0_61, %c0_62] : memref<1x8x128xbf16, #tpu.memory_space<vmem>>, vector<1x8x128xbf16>
    tpu.vector_store %arg20[%c0_60, %c0_61, %c0_62], %135 {strides = array<i32>} : memref<1x8x128xbf16, #tpu.memory_space<vmem>>, vector<1x8x128xbf16>,
    return
  }
  func.func @transform_0(%arg0: i32) -> (i32, i32, i32) {
    %c0_i32 = arith.constant 0 : i32
    %c0_i32_0 = arith.constant 0 : i32
    %c0_i32_1 = arith.constant 0 : i32
    return %arg0, %c0_i32, %c0_i32_0 : i32, i32, i32
  }
  func.func @transform_1(%arg0: i32) -> (i32, i32, i32) {
    %c0_i32 = arith.constant 0 : i32
    %c0_i32_0 = arith.constant 0 : i32
    %c0_i32_1 = arith.constant 0 : i32
    return %arg0, %c0_i32, %c0_i32_0 : i32, i32, i32
  }
  func.func @transform_2(%arg0: i32) -> (i32, i32, i32) {
    %c0_i32 = arith.constant 0 : i32
    %c0_i32_0 = arith.constant 0 : i32
    %c0_i32_1 = arith.constant 0 : i32
    return %arg0, %c0_i32, %c0_i32_0 : i32, i32, i32
  }
  func.func @transform_3(%arg0: i32) -> (i32, i32) {
    %c0_i32 = arith.constant 0 : i32
    %c0_i32_0 = arith.constant 0 : i32
    %c0_i32_1 = arith.constant 0 : i32
    return %c0_i32, %c0_i32_0 : i32, i32
  }
  func.func @transform_4(%arg0: i32) -> (i32, i32) {
    %c0_i32 = arith.constant 0 : i32
    %c0_i32_0 = arith.constant 0 : i32
    %c0_i32_1 = arith.constant 0 : i32
    return %c0_i32, %c0_i32_0 : i32, i32
  }
  func.func @transform_5(%arg0: i32) -> (i32, i32) {
    %c0_i32 = arith.constant 0 : i32
    %c0_i32_0 = arith.constant 0 : i32
    %c0_i32_1 = arith.constant 0 : i32
    return %c0_i32, %c0_i32_0 : i32, i32
  }
  func.func @transform_6(%arg0: i32) -> (i32, i32) {
    %c0_i32 = arith.constant 0 : i32
    %c0_i32_0 = arith.constant 0 : i32
    %c0_i32_1 = arith.constant 0 : i32
    return %c0_i32, %c0_i32_0 : i32, i32
  }
  func.func @transform_7(%arg0: i32) -> (i32, i32) {
    %c0_i32 = arith.constant 0 : i32
    %c0_i32_0 = arith.constant 0 : i32
    %c0_i32_1 = arith.constant 0 : i32
    return %c0_i32, %c0_i32_0 : i32, i32
  }
  func.func @transform_8(%arg0: i32) -> (i32, i32) {
    %c0_i32 = arith.constant 0 : i32
    %c0_i32_0 = arith.constant 0 : i32
    %c0_i32_1 = arith.constant 0 : i32
    return %c0_i32, %c0_i32_0 : i32, i32
  }
  func.func @transform_9(%arg0: i32) -> (i32, i32) {
    %c0_i32 = arith.constant 0 : i32
    %c0_i32_0 = arith.constant 0 : i32
    %c0_i32_1 = arith.constant 0 : i32
    return %c0_i32, %c0_i32_0 : i32, i32
  }
  func.func @transform_10(%arg0: i32) -> (i32, i32) {
    %c0_i32 = arith.constant 0 : i32
    %c0_i32_0 = arith.constant 0 : i32
    %c0_i32_1 = arith.constant 0 : i32
    return %c0_i32, %c0_i32_0 : i32, i32
  }
  func.func @transform_11(%arg0: i32) -> (i32, i32) {
    %c0_i32 = arith.constant 0 : i32
    %c0_i32_0 = arith.constant 0 : i32
    %c0_i32_1 = arith.constant 0 : i32
    return %c0_i32, %c0_i32_0 : i32, i32
  }
  func.func @transform_12(%arg0: i32) -> (i32, i32) {
    %c0_i32 = arith.constant 0 : i32
    %c0_i32_0 = arith.constant 0 : i32
    %c0_i32_1 = arith.constant 0 : i32
    return %c0_i32, %c0_i32_0 : i32, i32
  }
  func.func @transform_13(%arg0: i32) -> (i32, i32) {
    %c0_i32 = arith.constant 0 : i32
    %c0_i32_0 = arith.constant 0 : i32
    %c0_i32_1 = arith.constant 0 : i32
    return %c0_i32, %c0_i32_0 : i32, i32
  }
  func.func @transform_14(%arg0: i32) -> (i32, i32) {
    %c0_i32 = arith.constant 0 : i32
    %c0_i32_0 = arith.constant 0 : i32
    %c0_i32_1 = arith.constant 0 : i32
    return %c0_i32, %c0_i32_0 : i32, i32
  }
  func.func @transform_15(%arg0: i32) -> (i32, i32) {
    %c0_i32 = arith.constant 0 : i32
    %c0_i32_0 = arith.constant 0 : i32
    %c0_i32_1 = arith.constant 0 : i32
    return %c0_i32, %c0_i32_0 : i32, i32
  }
  func.func @transform_16(%arg0: i32) -> (i32, i32) {
    %c0_i32 = arith.constant 0 : i32
    %c0_i32_0 = arith.constant 0 : i32
    %c0_i32_1 = arith.constant 0 : i32
    return %c0_i32, %c0_i32_0 : i32, i32
  }
  func.func @transform_17(%arg0: i32) -> (i32, i32) {
    %c0_i32 = arith.constant 0 : i32
    %c0_i32_0 = arith.constant 0 : i32
    %c0_i32_1 = arith.constant 0 : i32
    return %c0_i32, %c0_i32_0 : i32, i32
  }
  func.func @transform_18(%arg0: i32) -> (i32, i32) {
    %c0_i32 = arith.constant 0 : i32
    %c0_i32_0 = arith.constant 0 : i32
    %c0_i32_1 = arith.constant 0 : i32
    return %c0_i32, %c0_i32_0 : i32, i32
  }
  func.func @transform_19(%arg0: i32) -> (i32, i32, i32) {
    %c0_i32 = arith.constant 0 : i32
    %c0_i32_0 = arith.constant 0 : i32
    %c0_i32_1 = arith.constant 0 : i32
    return %arg0, %c0_i32, %c0_i32_0 : i32, i32, i32
  }
}

</mosaic_0001>

<bundles_post_ra>
// kernel: tpu_custom_call.1
= control target key start
LH: loop header
LB: loop body
LE: loop exit
PB: predicated region body
PF: predicated region fallthrough
CT: control target
= control target key end

     0   :  { %s3817_s0 = inlined_call_operand.hbm [shape: bf16[2,8,128], index: 0, kind: input, shape index: {}]   ;;  %s3818_s1 = inlined_call_operand.hbm [shape: bf16[2,8,128], index: 1, kind: input, shape index: {}]   ;;  %s3819_s2 = inlined_call_operand.hbm [shape: bf16[2,8,128], index: 2, kind: input, shape index: {}]   ;;  %s3820_s3 = inlined_call_operand.hbm [shape: bf16[128,128], index: 3, kind: input, shape index: {}]   ;;  %s3821_s4 = inlined_call_operand.hbm [shape: bf16[128,128], index: 4, kind: input, shape index: {}]   ;;  %s3822_s5 = inlined_call_operand.hbm [shape: bf16[128,128], index: 5, kind: input, shape index: {}]   ;;  %s3823_s6 = inlined_call_operand.vmem [shape: f32[1,128], index: 6, kind: input, shape index: {}]   ;;  %s3824_s7 = inlined_call_operand.vmem [shape: f32[1,128], index: 7, kind: input, shape index: {}]   ;;  %s3825_s8 = inlined_call_operand.vmem [shape: f32[1,128], index: 8, kind: input, shape index: {}]   ;;  %s3826_s9 = inlined_call_operand.hbm [shape: bf16[128,128], index: 9, kind: input, shape index: {}]   ;;  %s3827_s10 = inlined_call_operand.vmem [shape: f32[1,128], index: 10, kind: input, shape index: {}]   ;;  %s3828_s11 = inlined_call_operand.hbm [shape: bf16[128,256], index: 11, kind: input, shape index: {}]   ;;  %s3829_s12 = inlined_call_operand.vmem [shape: f32[1,256], index: 12, kind: input, shape index: {}]   ;;  %s3830_s13 = inlined_call_operand.hbm [shape: bf16[256,128], index: 13, kind: input, shape index: {}]   ;;  %s3831_s14 = inlined_call_operand.vmem [shape: f32[1,128], index: 14, kind: input, shape index: {}]   ;;  %s3832_s15 = inlined_call_operand.vmem [shape: f32[1,128], index: 15, kind: input, shape index: {}]   ;;  %s3833_s16 = inlined_call_operand.vmem [shape: f32[1,128], index: 16, kind: input, shape index: {}]   ;;  %s3834_s17 = inlined_call_operand.vmem [shape: f32[1,128], index: 17, kind: input, shape index: {}]   ;;  %s3835_s18 = inlined_call_operand.vmem [shape: f32[1,128], index: 18, kind: input, shape index: {}]   ;;  %s3836_s19 = inlined_call_operand.hbm [shape: bf16[2,8,128], index: 19, kind: output, shape index: {}]  }
   0x1   :  { %3868 = sst [smem:[#allocation30_spill]] %s3817_s0 }
   0x2   :  { %3869 = sst [smem:[#allocation31_spill]] %s3818_s1 }
   0x3   :  { %3870 = sst [smem:[#allocation32_spill]] %s3819_s2 }
   0x4   :  { %3871 = sst [smem:[#allocation33_spill]] %s3820_s3 }
   0x5   :  { %3872 = sst [smem:[#allocation34_spill]] %s3821_s4 }
   0x6   :  { %3873 = sst [smem:[#allocation35_spill]] %s3822_s5 }
   0x7   :  { %3874 = sst [smem:[#allocation36_spill]] %s3827_s10 }
   0x8   :  { %3875 = sst [smem:[#allocation37_spill]] %s3828_s11 }
   0x9   :  { %3876 = sst [smem:[#allocation38_spill]] %s3829_s12 }
   0xa   :  { %3877 = sst [smem:[#allocation39_spill]] %s3831_s14 }
   0xb   :  { %3878 = sst [smem:[#allocation40_spill]] %s3832_s15 }
   0xc   :  { %3879 = sst [smem:[#allocation41_spill]] %s3833_s16 }
   0xd   :  { %3880 = sst [smem:[#allocation42_spill]] %s3834_s17 }
   0xe   :  { %3881 = sst [smem:[#allocation43_spill]] %s3835_s18 }
   0xf   :  { %3882 = sst [smem:[#allocation44_spill]] %s3836_s19 }
  0x10   :  { %24 = vsyncpa [#allocation3], 0 }
  0x11   :  { %26 = vsyncpa [#allocation3 + $0x1], 0 }
  0x12   :  { %27 = vsyncpa [#allocation6], 0 }
  0x13   :  { %29 = vsyncpa [#allocation6 + $0x1], 0 }
  0x14   :  { %30 = vsyncpa [#allocation9], 0 }
  0x15   :  { %31 = vsyncpa [#allocation12], 0 }
  0x16   :  { %32 = vsyncpa [#allocation15], 0 }
  0x17   :  { %33 = vsyncpa [#allocation4], 0 }
  0x18   :  { %35 = vsyncpa [#allocation4 + $0x1], 0  ;;  %s3261_s0 = smov 0   ;;  %s3263_s30 = smov 0  }
  0x19   :  { %s3265_s20 = smov 0   ;;  %s3267_s21 = smov 0  }
  0x1a LB: > { %3883 = sst [smem:[#allocation24_spill]] %s3127_s0  ;;  %s3141_s1 = smov [#allocation8]   ;;  %s3139_s21 = sphi %s3267_s21, %s3935_s21   ;;  %s3135_s20 = sphi %s3265_s20, %s3939_s20   ;;  %s3131_s30 = sphi %s3263_s30, %s3938_s30   ;;  %s3127_s0 = sphi %s3261_s0, %s3937_s0  }
  0x1b   : > { %3884 = sst [smem:[#allocation25_spill]] %s3139_s21  ;;  %s498_s22 = sshll.u32 %s3141_s1, 4  ;;  %s3287_s22 = int_to_ptr.vmem [resolvable:$true] %s498_s22 }
  0x1c   : > { %s3282_s2 = sadd.s32 4294967295, %s3139_s21   ;;  %p2268_p0 = scmp.ge.s32.totalorder %s3139_s21, 1 }
  0x1d   : > { %p3852_p1 = scmp.eq.s32.totalorder %s3282_s2, 0  ;;  %p486_p2 = scmp.lt.s32.totalorder %s3139_s21, 3 }
  0x1e   : > { %s3142_s24 = smov [#allocation11]   ;;  %s3143_s26 = smov [#allocation14]  }
  0x1f   : > { %p3289_p3 = pnand %p2268_p0, %p486_p2  ;;  %s524_s25 = sshll.u32 %s3142_s24, 4  ;;  %s3302_s25 = int_to_ptr.vmem [resolvable:$true] %s524_s25 }
  0x20   : > { %s562_s27 = sshll.u32 %s3143_s26, 4  ;;  %s3887_s1 = sld [smem:[#allocation33_spill]]  ;;  %s3304_s27 = int_to_ptr.vmem [resolvable:$true] %s562_s27 }
  0x21   : > { %s3885_s23 = scalar_select %p3289_p3, 1, 0 }
  0x22   : > { %p2612_p5 = pneg %p3289_p3 }
  0x24   : > { %p3298_p6 = pnand %p2612_p5, %p3852_p1 }
  0x26   : > { %s3886_s3 = scalar_select %p3298_p6, 1, 0 }
  0x27   : > { %s2799_s19 = scalar_lea.hbm %s3887_s1, 1024  ;;  %p3314_p8 = pneg %p3298_p6 }
  0x28   : > { %p2800_p7 = scmp.ne.s32.totalorder %s3887_s1, %s2799_s19  ;;  %p2806_p11 = scmp.lt.u32.totalorder %s2799_s19, %s3887_s1 }
  0x29   : > { %s3888_s24 = scalar_select %p3314_p8, 1, 0 }
  0x2a   : > { %p2802_p9 = pnand %p3314_p8, %p2800_p7 }
  0x2c   : > { %p2803_p10 = pneg %p2802_p9 }
  0x2e   : > { %p2808_p12 = pnand %p2806_p11, %p2803_p10 }
  0x30   : > { %2811 = shalt.err (!%p2808_p12)
}
  0x31   : > { %s2812_s17 = scalar_lea.vmem %s3287_s22, 1024  ;;  %p2820_p5 = scmp.lt.s32.totalorder %s3287_s22, %s3287_s22 }
  0x32   : > { %p2813_p13 = scmp.ne.s32.totalorder %s3287_s22, %s2812_s17  ;;  %p2821_p4 = scmp.lt.s32.totalorder %s2812_s17, %s2812_s17 }
  0x34   : > { %p2815_p0 = pnand %p2813_p13, %p3314_p8  ;;  %p2822_p7 = por %p2821_p4, %p2820_p5 }
  0x36   : > { %p2816_p2 = pneg %p2815_p0 }
  0x38   : > { %p2823_p9 = pnand %p2822_p7, %p2816_p2 }
  0x3a   : > { %2826 = shalt.err (!%p2823_p9)
}
  0x3b   : > { %s3843_s18 = smov 64   ;;  %s3845_s14 = smov 4  }
  0x3c   : > { %2615 = dma.hbm_to_vmem [thread:$0]  (!%p3298_p6), %s3887_s1, 1024, %s3287_s22, [#allocation9], %s3843_s18, %s3843_s18, %s3845_s14  }
  0x3d   : > { %s3889_s5 = sld [smem:[#allocation35_spill]] }
  0x43   : > { %s2827_s17 = scalar_lea.hbm %s3889_s5, 1024 }
  0x44   : > { %p2828_p4 = scmp.ne.s32.totalorder %s3889_s5, %s2827_s17  ;;  %p2834_p12 = scmp.lt.u32.totalorder %s2827_s17, %s3889_s5 }
  0x46   : > { %p2830_p10 = pnand %p2828_p4, %p3314_p8 }
  0x48   : > { %p2831_p11 = pneg %p2830_p10 }
  0x4a   : > { %p2836_p13 = pnand %p2834_p12, %p2831_p11 }
  0x4c   : > { %2839 = shalt.err (!%p2836_p13)
}
  0x4d   : > { %s2840_s22 = scalar_lea.vmem %s3302_s25, 1024  ;;  %p2848_p7 = scmp.lt.s32.totalorder %s3302_s25, %s3302_s25 }
  0x4e   : > { %p2841_p0 = scmp.ne.s32.totalorder %s3302_s25, %s2840_s22  ;;  %p2849_p9 = scmp.lt.s32.totalorder %s2840_s22, %s2840_s22 }
  0x50   : > { %p2843_p2 = pnand %p2841_p0, %p3314_p8  ;;  %p2850_p4 = por %p2849_p9, %p2848_p7 }
  0x52   : > { %p2844_p5 = pneg %p2843_p2 }
  0x54   : > { %p2851_p10 = pnand %p2850_p4, %p2844_p5 }
  0x56   : > { %2854 = shalt.err (!%p2851_p10)
}
  0x57   : > { %2621 = dma.hbm_to_vmem [thread:$0]  (!%p3298_p6), %s3889_s5, 1024, %s3302_s25, [#allocation12], %s3843_s18, %s3843_s18, %s3845_s14  }
  0x58   : > { %s3890_s11 = sld [smem:[#allocation37_spill]] }
  0x5e   : > { %s2855_s19 = scalar_lea.hbm %s3890_s11, 2048 }
  0x5f   : > { %p2856_p11 = scmp.ne.s32.totalorder %s3890_s11, %s2855_s19  ;;  %p2862_p0 = scmp.lt.u32.totalorder %s2855_s19, %s3890_s11 }
  0x61   : > { %p2858_p12 = pnand %p2856_p11, %p3314_p8 }
  0x63   : > { %p2859_p13 = pneg %p2858_p12 }
  0x65   : > { %p2864_p2 = pnand %p2862_p0, %p2859_p13 }
  0x67   : > { %2867 = shalt.err (!%p2864_p2)
}
  0x68   : > { %s2868_s25 = scalar_lea.vmem %s3304_s27, 2048  ;;  %p2876_p4 = scmp.lt.s32.totalorder %s3304_s27, %s3304_s27 }
  0x69   : > { %p2869_p5 = scmp.ne.s32.totalorder %s3304_s27, %s2868_s25  ;;  %p2877_p10 = scmp.lt.s32.totalorder %s2868_s25, %s2868_s25 }
  0x6b   : > { %p2871_p7 = pnand %p2869_p5, %p3314_p8  ;;  %p2878_p11 = por %p2877_p10, %p2876_p4 }
  0x6d   : > { %p2872_p9 = pneg %p2871_p7 }
  0x6f   : > { %p2879_p12 = pnand %p2878_p11, %p2872_p9 }
  0x71   : > { %2882 = shalt.err (!%p2879_p12)
}
  0x72   : > { %s3146_s22 = smov 128   ;;  %s3147_s10 = smov 8  }
  0x73   : > { %2627 = dma.hbm_to_vmem [thread:$0]  (!%p3298_p6), %s3890_s11, 2048, %s3304_s27, [#allocation15], %s3146_s22, %s3146_s22, %s3147_s10  }
  0x74   : > { %s2267_s16 = sadd.s32 4294967294, %s3139_s21   ;;  %s3389_s19 = sadd.s32 1, %s3139_s21  }
  0x75   : > { %3891 = sst [smem:[#allocation26_spill]] %s3389_s19  ;;  %s48_s28 = sadd.s32 1, %s3135_s20 }
  0x76   : > { %s45_s29 = ssub.s32 %s3139_s21, %s3389_s19  ;;  %p55_p13 = scmp.ne.s32.totalorder %s3135_s20, %s3131_s30 }
  0x77   : > { %p46_p0 = scmp.eq.s32.totalorder %s45_s29, 0  ;;  %p56_p2 = scmp.eq.s32.totalorder %s3139_s21, 0 }
  0x78   : > { %p61_p5 = scmp.ne.s32.totalorder %s3131_s30, %s3127_s0  ;;  %p473_p7 = scmp.eq.s32.totalorder %s3282_s2, 1 }
  0x79   : > { %s3401_s26 = scalar_select %p46_p0, %s3135_s20, %s48_s28  }
  0x7a   : > { %p57_p9 = por %p56_p2, %p55_p13  ;;  %p3405_p4 = por %p3852_p1, %p61_p5 }
  0x7b   : > { %3892 = sst [smem:[#allocation27_spill]] %s3401_s26  ;;  %p3409_p10 = por %p473_p7, %p55_p13 }
  0x7c   : > { %s3893_s27 = scalar_select %p3405_p4, 1, 0 }
  0x7d   : > { %s3894_s17 = scalar_select %p3409_p10, 1, 0 }
  0x7e   : > { %p479_p11 = scmp.eq.s32.totalorder %s2267_s16, 1  ;;  %p2651_p12 = scmp.lt.s32.totalorder %s3139_s21, 2 }
  0x7f   : > { %3895 = sst [smem:[#allocation28_spill]] %s3894_s17  ;;  %s3847_s25 = sand.u32 1, %s3135_s20  }
  0x80   : > { %p3415_p3 = por %p479_p11, %p61_p5  ;;  %s3421_s10 = sshll.u32 %s3847_s25, 2 }
  0x81   : > { %s3424_s12 = sshll.u32 %s3139_s21, 6  ;;  %p3426_p0 = pnand %p2651_p12, %p57_p9 }
  0x82   : > { %s3896_s22 = scalar_select %p3415_p3, 1, 0 }
  0x83   : > { %s3898_s15 = scalar_select %p3426_p0, 1, 0 }
  0x84   : > { %3897 = sst [smem:[#allocation29_spill]] %s3896_s22  ;;  %s625_s28 = sand.u32 1, %s3139_s21  }
  0x85   : > { %s3899_s18 = sld [smem:[#allocation31_spill]]  ;;  %s629_s25 = scalar_lea.vmem [#allocation5], %s3421_s10 }
  0x86   : > { %s636_s1 = sshll.u32 %s629_s25, 4  ;;  %s3440_s5 = scalar_lea.sflag [#allocation6], %s625_s28  ;;  %s3438_s1 = int_to_ptr.vmem [resolvable:$true] %s636_s1 }
  0x87   : > { %p3446_p2 = pneg %p3426_p0 }
  0x89   : > { %s3900_s26 = scalar_select %p3446_p2, 1, 0 }
  0x8b   : > { %s3435_s14 = scalar_lea.hbm %s3899_s18, %s3424_s12  ;;  %s2888_s19 = scalar_lea.hbm %s3899_s18, 128 }
  0x8c   : > { %s2883_s11 = scalar_lea.hbm %s3435_s14, 64  ;;  %p2889_p9 = scmp.lt.u32.totalorder %s3435_s14, %s3899_s18 }
  0x8d   : > { %p2884_p13 = scmp.ne.s32.totalorder %s3435_s14, %s2883_s11  ;;  %p2890_p11 = scmp.lt.u32.totalorder %s2888_s19, %s2883_s11 }
  0x8e   : > { %p2892_p1 = scmp.lt.u32.totalorder %s2883_s11, %s3435_s14 }
  0x8f   : > { %p2886_p5 = pnand %p3446_p2, %p2884_p13  ;;  %p2891_p12 = por %p2890_p11, %p2889_p9 }
  0x91   : > { %p2887_p7 = pneg %p2886_p5  ;;  %p2893_p3 = por %p2892_p1, %p2891_p12 }
  0x93   : > { %p2894_p10 = pnand %p2893_p3, %p2887_p7 }
  0x95   : > { %2897 = shalt.err (!%p2894_p10)
}
  0x96   : > { %s2898_s28 = scalar_lea.vmem %s3438_s1, 64  ;;  %s3148_s16 = smov [#allocation5]  }
  0x97   : > { %p2899_p13 = scmp.ne.s32.totalorder %s3438_s1, %s2898_s28  ;;  %s2903_s29 = sshll.u32 %s3148_s16, 4  ;;  %s2904_s29 = int_to_ptr.vmem [resolvable:$false] %s2903_s29 }
  0x98   : > { %s2905_s21 = scalar_lea.vmem %s2904_s29, 128  ;;  %p2906_p6 = scmp.lt.s32.totalorder %s3438_s1, %s2904_s29 }
  0x99   : > { %p2901_p5 = pnand %p2899_p13, %p3446_p2  ;;  %p2907_p8 = scmp.lt.s32.totalorder %s2905_s21, %s2898_s28 }
  0x9b   : > { %p2902_p4 = pneg %p2901_p5  ;;  %p2908_p9 = por %p2907_p8, %p2906_p6 }
  0x9d   : > { %p2909_p11 = pnand %p2908_p9, %p2902_p4 }
  0x9f   : > { %2912 = shalt.err (!%p2909_p11)
}
  0xa0   : > { %2637 = dma.hbm_to_vmem [thread:$0]  (!%p3426_p0), %s3435_s14, 64, %s3438_s1, %s3440_s5  }
  0xa1   : > { %s3149_s11 = smov [#allocation10]   ;;  %s3150_s25 = smov [#allocation13]  }
  0xa2   : > { %s511_s19 = sshll.u32 %s3149_s11, 4  ;;  %s546_s18 = sshll.u32 %s3150_s25, 4  ;;  %s512_s19 = int_to_ptr.vmem [resolvable:$true] %s511_s19  ;;  %s547_s18 = int_to_ptr.vmem [resolvable:$true] %s546_s18 }
  0xa3   : > { %s3901_s4 = sld [smem:[#allocation34_spill]]  ;;  %p3902_p3 = scmp.ne.s32.totalorder %s3888_s24, 0 }
  0xa9   : > { %s2913_s29 = scalar_lea.hbm %s3901_s4, 1024 }
  0xaa   : > { %p2914_p1 = scmp.ne.s32.totalorder %s3901_s4, %s2913_s29  ;;  %p2920_p4 = scmp.lt.u32.totalorder %s2913_s29, %s3901_s4 }
  0xac   : > { %p2916_p6 = pnand %p2914_p1, %p3902_p3 }
  0xae   : > { %p2917_p8 = pneg %p2916_p6 }
  0xb0   : > { %p2922_p10 = pnand %p2920_p4, %p2917_p8 }
  0xb2   : > { %2925 = shalt.err (!%p2922_p10)
}
  0xb3   : > { %s2926_s1 = scalar_lea.vmem %s512_s19, 1024  ;;  %p2934_p5 = scmp.lt.s32.totalorder %s512_s19, %s512_s19 }
  0xb4   : > { %p2927_p7 = scmp.ne.s32.totalorder %s512_s19, %s2926_s1  ;;  %p2935_p9 = scmp.lt.s32.totalorder %s2926_s1, %s2926_s1 }
  0xb6   : > { %p2929_p12 = pnand %p2927_p7, %p3902_p3  ;;  %p2936_p11 = por %p2935_p9, %p2934_p5 }
  0xb8   : > { %p2930_p13 = pneg %p2929_p12 }
  0xba   : > { %p2937_p0 = pnand %p2936_p11, %p2930_p13 }
  0xbc   : > { %2940 = shalt.err (!%p2937_p0)
}
  0xbd   : > { %p3903_p1 = scmp.ne.s32.totalorder %s3886_s3, 0  ;;  %s3904_s14 = smov 4  }
  0xbe   : > { %s3905_s22 = smov 64   ;;  %s2941_s16 = scalar_lea.hbm %s3826_s9, 1024 }
  0xbf   : > { %2618 = dma.hbm_to_vmem [thread:$0]  (!%p3903_p1), %s3901_s4, 1024, %s512_s19, [#allocation9], %s3905_s22, %s3905_s22, %s3904_s14  }
  0xc0   : > { %p2942_p6 = scmp.ne.s32.totalorder %s3826_s9, %s2941_s16  ;;  %p2948_p4 = scmp.lt.u32.totalorder %s2941_s16, %s3826_s9 }
  0xc2   : > { %p2944_p0 = pnand %p2942_p6, %p3902_p3 }
  0xc4   : > { %p2945_p8 = pneg %p2944_p0 }
  0xc6   : > { %p2950_p10 = pnand %p2948_p4, %p2945_p8 }
  0xc8   : > { %2953 = shalt.err (!%p2950_p10)
}
  0xc9   : > { %s2954_s0 = scalar_lea.vmem %s547_s18, 1024  ;;  %p2962_p5 = scmp.lt.s32.totalorder %s547_s18, %s547_s18 }
  0xca   : > { %p2955_p7 = scmp.ne.s32.totalorder %s547_s18, %s2954_s0  ;;  %p2963_p9 = scmp.lt.s32.totalorder %s2954_s0, %s2954_s0 }
  0xcc   : > { %p2957_p12 = pnand %p2955_p7, %p3902_p3  ;;  %p2964_p11 = por %p2963_p9, %p2962_p5 }
  0xce   : > { %p2958_p13 = pneg %p2957_p12 }
  0xd0   : > { %p2965_p2 = pnand %p2964_p11, %p2958_p13 }
  0xd2   : > { %2968 = shalt.err (!%p2965_p2)
}
  0xd3   : > { %2624 = dma.hbm_to_vmem [thread:$0]  (!%p3903_p1), %s3826_s9, 1024, %s547_s18, [#allocation12], %s3905_s22, %s3905_s22, %s3904_s14  }
  0xd4   : > { %s3151_s11 = smov [#allocation16]   ;;  %s2969_s28 = scalar_lea.hbm %s3830_s13, 2048 }
  0xd5   : > { %s578_s25 = sshll.u32 %s3151_s11, 4  ;;  %p2970_p2 = scmp.ne.s32.totalorder %s3830_s13, %s2969_s28  ;;  %s579_s25 = int_to_ptr.vmem [resolvable:$true] %s578_s25 }
  0xd6   : > { %p2976_p8 = scmp.lt.u32.totalorder %s2969_s28, %s3830_s13 }
  0xd7   : > { %p2972_p6 = pnand %p2970_p2, %p3902_p3 }
  0xd9   : > { %p2973_p0 = pneg %p2972_p6 }
  0xdb   : > { %p2978_p4 = pnand %p2976_p8, %p2973_p0 }
  0xdd   : > { %2981 = shalt.err (!%p2978_p4)
}
  0xde   : > { %s2982_s18 = scalar_lea.vmem %s579_s25, 2048  ;;  %p2990_p13 = scmp.lt.s32.totalorder %s579_s25, %s579_s25 }
  0xdf   : > { %p2983_p10 = scmp.ne.s32.totalorder %s579_s25, %s2982_s18  ;;  %p2991_p5 = scmp.lt.s32.totalorder %s2982_s18, %s2982_s18 }
  0xe1   : > { %p2985_p7 = pnand %p2983_p10, %p3902_p3  ;;  %p2992_p9 = por %p2991_p5, %p2990_p13 }
  0xe3   : > { %p2986_p12 = pneg %p2985_p7 }
  0xe5   : > { %p2993_p11 = pnand %p2992_p9, %p2986_p12 }
  0xe7   : > { %2996 = shalt.err (!%p2993_p11)
}
  0xe8   : > { %2630 = dma.hbm_to_vmem [thread:$0]  (!%p3903_p1), %s3830_s13, 2048, %s579_s25, [#allocation15], %s3905_s22, %s3905_s22, %s3904_s14  }
  0xe9   : > { %s3906_s11 = sld [smem:[#allocation30_spill]]  ;;  %s611_s3 = scalar_lea.vmem [#allocation2], %s3421_s10 }
  0xea   : > { %s618_s29 = sshll.u32 %s611_s3, 4  ;;  %s3907_s28 = sand.u32 1, %s3135_s20   ;;  %s619_s29 = int_to_ptr.vmem [resolvable:$true] %s618_s29 }
  0xeb   : > { %s608_s21 = scalar_lea.sflag [#allocation3], %s3907_s28  ;;  %p3908_p2 = scmp.ne.s32.totalorder %s3900_s26, 0 }
  0xef   : > { %s3537_s16 = scalar_lea.hbm %s3906_s11, %s3424_s12  ;;  %s3002_s25 = scalar_lea.hbm %s3906_s11, 128 }
  0xf0   : > { %s2997_s1 = scalar_lea.hbm %s3537_s16, 64  ;;  %p3003_p1 = scmp.lt.u32.totalorder %s3537_s16, %s3906_s11 }
  0xf1   : > { %p2998_p3 = scmp.ne.s32.totalorder %s3537_s16, %s2997_s1  ;;  %p3004_p8 = scmp.lt.u32.totalorder %s3002_s25, %s2997_s1 }
  0xf2   : > { %p3006_p10 = scmp.lt.u32.totalorder %s2997_s1, %s3537_s16 }
  0xf3   : > { %p3000_p6 = pnand %p2998_p3, %p3908_p2  ;;  %p3005_p4 = por %p3004_p8, %p3003_p1 }
  0xf5   : > { %p3001_p0 = pneg %p3000_p6  ;;  %p3007_p7 = por %p3006_p10, %p3005_p4 }
  0xf7   : > { %p3008_p12 = pnand %p3007_p7, %p3001_p0 }
  0xf9   : > { %3011 = shalt.err (!%p3008_p12)
}
  0xfa   : > { %s3012_s4 = scalar_lea.vmem %s619_s29, 64  ;;  %s3152_s19 = smov [#allocation2]  }
  0xfb   : > { %p3013_p13 = scmp.ne.s32.totalorder %s619_s29, %s3012_s4  ;;  %s3017_s24 = sshll.u32 %s3152_s19, 4  ;;  %s3018_s24 = int_to_ptr.vmem [resolvable:$false] %s3017_s24 }
  0xfc   : > { %s3019_s17 = scalar_lea.vmem %s3018_s24, 128  ;;  %p3020_p11 = scmp.lt.s32.totalorder %s619_s29, %s3018_s24 }
  0xfd   : > { %p3015_p5 = pnand %p3013_p13, %p3908_p2  ;;  %p3021_p3 = scmp.lt.s32.totalorder %s3019_s17, %s3012_s4 }
  0xff   : > { %p3016_p9 = pneg %p3015_p5  ;;  %p3022_p6 = por %p3021_p3, %p3020_p11 }
 0x101   : > { %p3023_p1 = pnand %p3022_p6, %p3016_p9 }
 0x103   : > { %3026 = shalt.err (!%p3023_p1)
}
 0x104   : > { %p3909_p8 = scmp.ne.s32.totalorder %s3898_s15, 0  ;;  %s3910_s1 = sld [smem:[#allocation32_spill]] }
 0x105   : > { %s647_s22 = scalar_lea.vmem [#allocation7], %s3421_s10 }
 0x106   : > { %2634 = dma.hbm_to_vmem [thread:$0]  (!%p3909_p8), %s3537_s16, 64, %s619_s29, %s608_s21  }
 0x107   : > { %s654_s25 = sshll.u32 %s647_s22, 4  ;;  %s655_s25 = int_to_ptr.vmem [resolvable:$true] %s654_s25 }
 0x10a   : > { %s3563_s14 = scalar_lea.hbm %s3910_s1, %s3424_s12  ;;  %s3032_s16 = scalar_lea.hbm %s3910_s1, 128 }
 0x10b   : > { %s3027_s0 = scalar_lea.hbm %s3563_s14, 64  ;;  %p3033_p7 = scmp.lt.u32.totalorder %s3563_s14, %s3910_s1 }
 0x10c   : > { %p3028_p0 = scmp.ne.s32.totalorder %s3563_s14, %s3027_s0  ;;  %p3034_p12 = scmp.lt.u32.totalorder %s3032_s16, %s3027_s0 }
 0x10d   : > { %p3036_p5 = scmp.lt.u32.totalorder %s3027_s0, %s3563_s14 }
 0x10e   : > { %p3030_p4 = pnand %p3028_p0, %p3908_p2  ;;  %p3035_p13 = por %p3034_p12, %p3033_p7 }
 0x110   : > { %p3031_p10 = pneg %p3030_p4  ;;  %p3037_p9 = por %p3036_p5, %p3035_p13 }
 0x112   : > { %p3038_p11 = pnand %p3037_p9, %p3031_p10 }
 0x114   : > { %3041 = shalt.err (!%p3038_p11)
}
 0x115   : > { %s3042_s10 = scalar_lea.vmem %s655_s25, 64  ;;  %s3153_s12 = smov [#allocation7]  }
 0x116   : > { %p3043_p3 = scmp.ne.s32.totalorder %s655_s25, %s3042_s10  ;;  %s3047_s19 = sshll.u32 %s3153_s12, 4  ;;  %s3048_s19 = int_to_ptr.vmem [resolvable:$false] %s3047_s19 }
 0x117   : > { %s3049_s24 = scalar_lea.vmem %s3048_s19, 128  ;;  %p3050_p0 = scmp.lt.s32.totalorder %s655_s25, %s3048_s19 }
 0x118   : > { %p3045_p6 = pnand %p3043_p3, %p3908_p2  ;;  %p3051_p4 = scmp.lt.s32.totalorder %s3049_s24, %s3042_s10 }
 0x11a   : > { %p3046_p1 = pneg %p3045_p6  ;;  %p3052_p8 = por %p3051_p4, %p3050_p0 }
 0x11c   : > { %p3053_p7 = pnand %p3052_p8, %p3046_p1 }
 0x11e   : > { %3056 = shalt.err (!%p3053_p7)
}
 0x11f   : > { %p3911_p12 = scmp.ne.s32.totalorder %s3898_s15, 0  ;;  %p3912_p10 = scmp.ne.s32.totalorder %s3885_s23, 0 }
 0x120   : > { %s3587_s26 = sand.u32 (!%p3912_p10), 1, %s3131_s30   ;;  %p3913_p2 = scmp.ne.s32.totalorder (!%p3912_p10), %s3893_s27, 0 }
 0x121   : > { %2640 = dma.hbm_to_vmem [thread:$0]  (!%p3911_p12), %s3563_s14, 64, %s655_s25, %s3440_s5  }
 0x122   : > { %663 = sbr.rel (%p3912_p10) target bundleno = 2567 (0xa07), region = 96  ;;  %s3590_s17 = sshll.u32 (!%p3912_p10), %s3587_s26, 2 }
 0x123   : > { %s666_s3 = scalar_lea.sflag (!%p3912_p10), [#allocation3], %s3587_s26  ;;  %s669_s28 = scalar_lea.vmem (!%p3912_p10), [#allocation2], %s3590_s17 }
 0x129   : > { %3102 = dma.done.wait (%p3913_p2), %s666_s3, 64  }
 0x12a   : > { %3104 = vsyncadd (%p3913_p2), %s666_s3, 4294967232  ;;  %s674_s5 = sand.u32 1, %s3282_s2   ;;  %s678_s15 = scalar_lea.vmem [#allocation5], %s3590_s17 }
 0x12b   : > { %s675_s23 = scalar_lea.sflag [#allocation6], %s674_s5 }
 0x12c   : > { %3106 = dma.done.wait (%p3913_p2), %s675_s23, 128  }
 0x12d   : > { %3108 = vsyncadd (%p3913_p2), %s675_s23, 4294967168  ;;  %s687_s14 = scalar_lea.vmem [#allocation7], %s3590_s17  ;;  %p3914_p8 = scmp.eq.s32.totalorder %s3282_s2, 0 }
 0x12f   : > { %3110 = dma.done.wait (%p3914_p8), [#allocation9], 2048   ;;  %p3915_p13 = pmov %p3914_p8 }
 0x130   : > { %p3916_p5 = pmov %p3914_p8 }
 0x131   : > { %3112 = vsyncadd (%p3915_p13), [#allocation9], 4294965248 }
 0x132   : > { %3114 = dma.done.wait (%p3916_p5), [#allocation12], 2048   ;;  %p3917_p9 = pmov %p3916_p5 }
 0x133   : > { %p3918_p11 = pmov %p3916_p5 }
 0x134   : > { %3116 = vsyncadd (%p3917_p9), [#allocation12], 4294965248 }
 0x135   : > { %3118 = dma.done.wait (%p3918_p11), [#allocation15], 4096   ;;  %p3919_p3 = pmov %p3916_p5 }
 0x136   : > { %v3154_v0 = vmov 0.0   ;;  %vm3155_vm0 = vmmov 0   ;;  %v2707_v1 = vld [vmem:[#allocation10] sm:$0xff]   ;;  %v2709_v3 = vld [vmem:[#allocation10 + $0x8] sm:$0xff]   ;;  %v2711_v5 = vld [vmem:[#allocation10 + $0x10] sm:$0xff]   ;;  %vm1138_vm1 = vcmask 261120  }
 0x137   : > { %3120 = vsyncadd (%p3919_p3), [#allocation15], 4294963200  ;;  %2472 = vmatprep.subr.bf16.mxu1 %v3154_v0  ;;  %2452 = vmatprep.subr.bf16.mxu0 %v3154_v0  ;;  %v2708_v2 = vld [vmem:[#allocation8] sm:$0xff]   ;;  %v2710_v4 = vld [vmem:[#allocation8 + $0x8] sm:$0xff]   ;;  %s3156_s18 = smov 64   ;;  %s3157_s4 = smov 96  }
 0x138   : > { %2488 = vmatprep.mubr.msk.bf16.mxu1 %vm3155_vm0, %v3154_v0  ;;  %2468 = vmatprep.mubr.msk.bf16.mxu0 %vm3155_vm0, %v3154_v0  ;;  %v2712_v6 = vld [vmem:[#allocation8 + $0x10] sm:$0xff]   ;;  %v2713_v7 = vld [vmem:[#allocation10 + $0x18] sm:$0xff]   ;;  %v2715_v9 = vld [vmem:[#allocation10 + $0x20] sm:$0xff]   ;;  %s3158_s16 = smov 32   ;;  %vm1323_vm2 = vcmask 64512   ;;  %vm1375_vm3 = vcmask 1043456  }
 0x139   : > { %2473 = vmatpush3.bf16.msra.mxu1 %v2707_v1  ;;  %2453 = vmatpush3.bf16.msra.mxu0 %v2708_v2  ;;  %v2714_v8 = vld [vmem:[#allocation8 + $0x18] sm:$0xff]   ;;  %v2716_v10 = vld [vmem:[#allocation8 + $0x20] sm:$0xff]   ;;  %v2717_v11 = vld [vmem:[#allocation10 + $0x28] sm:$0xff]   ;;  %vm1573_vm4 = vcmask 523264   ;;  %vm1576_vm5 = vcmask 785408   ;;  %s3920_s19 = sld [smem:[#allocation36_spill]] }
 0x13a   : > { %2474 = vmatprep.subr.bf16.mxu1 %v3154_v0  ;;  %2454 = vmatprep.subr.bf16.mxu0 %v3154_v0  ;;  %v2718_v12 = vld [vmem:[#allocation8 + $0x28] sm:$0xff]   ;;  %v2719_v13 = vld [vmem:[#allocation10 + $0x30] sm:$0xff]   ;;  %v2721_v15 = vld [vmem:[#allocation10 + $0x38] sm:$0xff]   ;;  %s3923_s22 = sld [smem:[#allocation38_spill]]  ;;  %s3925_s29 = sld [smem:[#allocation42_spill]] }
 0x13b   : > { %v2720_v14 = vld [vmem:[#allocation8 + $0x30] sm:$0xff]   ;;  %v2722_v16 = vld [vmem:[#allocation8 + $0x38] sm:$0xff]   ;;  %v3637_v17 = vld [vmem:[%s669_s28] sm:$0xf]  ;;  %s3921_s28 = sld [smem:[#allocation40_spill]]  ;;  %s3926_s21 = sld [smem:[#allocation28_spill]] }
 0x13c   : > { %v779_v18 = vld [vmem:[%s687_s14] sm:$0xf]  ;;  %v3645_v19 = vld [vmem:[%s678_s15] sm:$0xf]  ;;  %v2302_v21 = vld [vmem:[%s3824_s7] ss:$0 sm:$0xff] }
 0x13d   : > { %2475 = vmatpush3.bf16.msra.mxu1 %v2709_v3  ;;  %2455 = vmatpush3.bf16.msra.mxu0 %v2710_v4  ;;  %v780_v20 = vadd.bf16 %v779_v18, %v3637_v17  ;;  %v2293_v22 = vld [vmem:[%s3823_s6] ss:$0 sm:$0xff]  ;;  %v2723_v36 = vld [vmem:[#allocation11] sm:$0xff]   ;;  %v2725_v38 = vld [vmem:[#allocation11 + $0x10] sm:$0xff]   ;;  %s3922_s15 = sld [smem:[#allocation41_spill]]  ;;  %s2375_s24 = sshll.u32 %s3282_s2, 6 }
 0x13e   : > { %2476 = vmatprep.subr.bf16.mxu1 %v3154_v0  ;;  %2456 = vmatprep.subr.bf16.mxu0 %v3154_v0  ;;  %v2724_v37 = vld [vmem:[#allocation11 + $0x8] sm:$0xff]   ;;  %v2726_v39 = vld [vmem:[#allocation11 + $0x18] sm:$0xff]   ;;  %v2727_v40 = vld [vmem:[#allocation11 + $0x20] sm:$0xff]   ;;  %s775_s3 = scalar_lea.vmem [#allocation17], %s3590_s17  ;;  %s2084_s27 = scalar_lea.sflag [#allocation4], %s3587_s26 }
 0x13f   : > { %v2728_v41 = vld [vmem:[#allocation11 + $0x28] sm:$0xff]   ;;  %v2729_v42 = vld [vmem:[#allocation11 + $0x30] sm:$0xff]   ;;  %v2730_v44 = vld [vmem:[#allocation11 + $0x38] sm:$0xff]   ;;  %s3160_s2 = smov [#allocation17]  }
 0x140   : > { %v2311_v58 = vld [vmem:[%s3825_s8] ss:$0 sm:$0xff]  ;;  %s3061_s17 = sshll.u32 %s3160_s2, 4  ;;  %s3062_s17 = int_to_ptr.vmem [resolvable:$false] %s3061_s17 }
 0x141   : > { %2477 = vmatpush3.bf16.msra.mxu1 %v2711_v5  ;;  %2457 = vmatpush3.bf16.msra.mxu0 %v2712_v6  ;;  %p3929_p1 = scmp.ne.s32.totalorder %s3926_s21, 0  ;;  %s3063_s25 = scalar_lea.vmem %s3062_s17, 128 }
 0x142   : > { %2478 = vmatprep.subr.bf16.mxu1 %v3154_v0  ;;  %2458 = vmatprep.subr.bf16.mxu0 %v3154_v0 }
 0x145   : > { %2479 = vmatpush3.bf16.msra.mxu1 %v2713_v7  ;;  %2459 = vmatpush3.bf16.msra.mxu0 %v2714_v8 }
 0x146   : > { %2480 = vmatprep.subr.bf16.mxu1 %v3154_v0  ;;  %2460 = vmatprep.subr.bf16.mxu0 %v3154_v0 }
 0x149   : > { %2481 = vmatpush3.bf16.msra.mxu1 %v2715_v9  ;;  %2461 = vmatpush3.bf16.msra.mxu0 %v2716_v10 }
 0x14a   : > { %2482 = vmatprep.subr.bf16.mxu1 %v3154_v0  ;;  %2462 = vmatprep.subr.bf16.mxu0 %v3154_v0 }
 0x14d   : > { %2483 = vmatpush3.bf16.msra.mxu1 %v2717_v11  ;;  %2463 = vmatpush3.bf16.msra.mxu0 %v2718_v12 }
 0x14e   : > { %2484 = vmatprep.subr.bf16.mxu1 %v3154_v0  ;;  %2464 = vmatprep.subr.bf16.mxu0 %v3154_v0 }
 0x151   : > { %2485 = vmatpush3.bf16.msra.mxu1 %v2719_v13  ;;  %2465 = vmatpush3.bf16.msra.mxu0 %v2720_v14 }
 0x152   : > { %2486 = vmatprep.subr.bf16.mxu1 %v3154_v0  ;;  %2466 = vmatprep.subr.bf16.mxu0 %v3154_v0 }
 0x155   : > { %2487 = vmatpush3.bf16.msra.mxu1 %v2721_v15  ;;  %2467 = vmatpush3.bf16.msra.mxu0 %v2722_v16 }
 0x156   : > { %2512 = vmatprep.subr.bf16.mxu1 %v3154_v0  ;;  %2492 = vmatprep.subr.bf16.mxu0 %v3154_v0 }
 0x158   : > { %2489 = vmatmul.mubr.bf16.vlgmr.msra.gmra.mrb[0].mxu1 %v3645_v19  ;;  %2469 = vmatmul.mubr.bf16.vlgmr.msra.gmra.mrb[0].mxu0 %v780_v20 }
 0x159   : > { %2514 = vmatprep.mubr.msk.bf16.mxu1 %vm3155_vm0, %v3154_v0  ;;  %2508 = vmatprep.mubr.msk.bf16.mxu0 %vm3155_vm0, %v3154_v0 }
 0x15a   : > { %2493 = vmatpush3.bf16.msra.mxu0 %v2723_v36 }
 0x15b   : > { %2494 = vmatprep.subr.bf16.mxu0 %v3154_v0 }
 0x15e   : > { %2495 = vmatpush3.bf16.msra.mxu0 %v2724_v37 }
 0x15f   : > { %2496 = vmatprep.subr.bf16.mxu0 %v3154_v0 }
 0x162   : > { %2497 = vmatpush3.bf16.msra.mxu0 %v2725_v38 }
 0x163   : > { %2498 = vmatprep.subr.bf16.mxu0 %v3154_v0 }
 0x166   : > { %2499 = vmatpush3.bf16.msra.mxu0 %v2726_v39 }
 0x167   : > { %2500 = vmatprep.subr.bf16.mxu0 %v3154_v0 }
 0x16a   : > { %2501 = vmatpush3.bf16.msra.mxu0 %v2727_v40 }
 0x16b   : > { %2502 = vmatprep.subr.bf16.mxu0 %v3154_v0 }
 0x16e   : > { %2503 = vmatpush3.bf16.msra.mxu0 %v2728_v41 }
 0x16f   : > { %2504 = vmatprep.subr.bf16.mxu0 %v3154_v0 }
 0x172   : > { %2505 = vmatpush3.bf16.msra.mxu0 %v2729_v42 }
 0x173   : > { %2506 = vmatprep.subr.bf16.mxu0 %v3154_v0 }
 0x176   : > { %2507 = vmatpush3.bf16.msra.mxu0 %v2730_v44 }
 0x177   : > { %2560 = vmatprep.subr.bf16.mxu0 %v3154_v0 }
 0x179   : > { %2509 = vmatmul.mubr.bf16.vlgmr.msra.gmra.mrb[4].mxu0 %v3645_v19 }
 0x17a   : > { %2576 = vmatprep.mubr.msk.bf16.mxu0 %vm3155_vm0, %v3154_v0 }
 0x22b   : > { %v997_v23 = vpop.f32.mrb[0].mxu1  ;;  %v886_v26 = vpop.f32.mrb[0].mxu0 }
 0x22c   : > { %v998_v24 = vadd.f32 %v2302_v21, %v997_v23  ;;  %v2490_v25 = vpop.f32.mrb[1].mxu1  ;;  %v887_v28 = vadd.f32 %v2293_v22, %v886_v26  ;;  %v2470_v29 = vpop.f32.mrb[1].mxu0 }
 0x22d   : > { %v1000_v27 = vpop.f32.mrb[2].mxu1  ;;  %v889_v32 = vpop.f32.mrb[2].mxu0 }
 0x22e   : > { %v1115_v30 = vpack.c.bf16 %v998_v24, %v998_v24  ;;  %v2491_v31 = vpop.f32.mrb[3].mxu1  ;;  %v2471_v33 = vpop.f32.mrb[3].mxu0  ;;  %v1114_v34 = vpack.c.bf16 %v887_v28, %v887_v28 }
 0x230   : > { %1127 = vrot.lane.b32.xlu1 %v1115_v30, %s3156_s18  ;;  %1125 = vrot.lane.b32.xlu0 %v1115_v30, %s3157_s4  ;;  %v1143_v35 = vsel %vm1138_vm1, %v1115_v30, 0 }
 0x231   : > { %2513 = vmatpush3.bf16.xpose.msra.mxu1 %v1143_v35 }
 0x232   : > { %2518 = vmatprep.subr.bf16.mxu1 %v3154_v0 }
 0x234   : > { %1120 = vrot.lane.b32.xlu1 %v1114_v34, %s3156_s18  ;;  %1118 = vrot.lane.b32.xlu0 %v1114_v34, %s3157_s4 }
 0x238   : > { %1122 = vrot.lane.b32.xlu1 %v1114_v34, %s3158_s16  ;;  %1129 = vrot.lane.b32.xlu0 %v1115_v30, %s3158_s16 }
 0x239   : > { %2515 = vmatmul.mubr.msk.bf16.vlgmr.msra.gmra.mrb[4].mxu1 %vm1138_vm1, %v1114_v34 }
 0x23a   : > { %2520 = vmatprep.mubr.msk.bf16.mxu1 %vm3155_vm0, %v3154_v0 }
 0x24c   : > { %v1108_v59 = vpop.f32.mrb[4].mxu0 }
 0x24d   : > { %v1109_v60 = vadd.f32 %v2311_v58, %v1108_v59  ;;  %v2510_v61 = vpop.f32.mrb[5].mxu0 }
 0x24e   : > { %v1111_v63 = vpop.f32.mrb[6].mxu0 }
 0x24f   : > { %v1116_v3 = vpack.c.bf16 %v1109_v60, %v1109_v60  ;;  %v2511_v4 = vpop.f32.mrb[7].mxu0 }
 0x250   : > { %v2733_v4 = vld [vmem:[#allocation13 + $0x10] sm:$0xff]  }
 0x251   : > { %v1377_v7 = vsel %vm1375_vm3, %v1116_v3, 0 }
 0x2a2   : > { %v1126_v43 = vpop.permute.xlu0 %1125  ;;  %v1128_v46 = vpop.permute.xlu1 %1127 }
 0x2a3   : > { %v1189_v45 = vsel %vm1138_vm1, %v1126_v43, 0  ;;  %v1235_v48 = vsel %vm1138_vm1, %v1128_v46, 0 }
 0x2a4   : > { %2519 = vmatpush3.bf16.xpose.msra.mxu1 %v1189_v45 }
 0x2a5   : > { %2524 = vmatprep.subr.bf16.mxu1 %v3154_v0 }
 0x2a6   : > { %v1119_v47 = vpop.permute.xlu0 %1118  ;;  %v1121_v50 = vpop.permute.xlu1 %1120 }
 0x2aa   : > { %v1130_v49 = vpop.permute.xlu0 %1129  ;;  %v1123_v52 = vpop.permute.xlu1 %1122 }
 0x2ab   : > { %2521 = vmatmul.mubr.msk.bf16.vlgmr.msra.gmra.mrb[8].mxu1 %vm1138_vm1, %v1119_v47  ;;  %v1281_v51 = vsel %vm1138_vm1, %v1130_v49, 0 }
 0x2ac   : > { %2525 = vmatpush3.bf16.xpose.msra.mxu1 %v1235_v48  ;;  %2526 = vmatprep.mubr.msk.bf16.mxu1 %vm3155_vm0, %v3154_v0 }
 0x2ad   : > { %2530 = vmatprep.subr.bf16.mxu1 %v3154_v0 }
 0x2b3   : > { %2527 = vmatmul.mubr.msk.bf16.vlgmr.msra.gmra.mrb[12].mxu1 %vm1138_vm1, %v1121_v50 }
 0x2b4   : > { %2531 = vmatpush3.bf16.xpose.msra.mxu1 %v1281_v51  ;;  %2532 = vmatprep.mubr.msk.bf16.mxu1 %vm3155_vm0, %v3154_v0 }
 0x2b5   : > { %2536 = vmatprep.subr.bf16.mxu1 %v3154_v0 }
 0x2bb   : > { %2533 = vmatmul.mubr.msk.bf16.vlgmr.msra.gmra.mrb[16].mxu1 %vm1138_vm1, %v1123_v52 }
 0x2bc   : > { %2538 = vmatprep.mubr.msk.bf16.mxu1 %vm3155_vm0, %v3154_v0  ;;  %2537 = vmatpush3.bf16.msra.mxu1 %v1377_v7  ;;  %v2736_v7 = vld [vmem:[#allocation13 + $0x28] sm:$0xff]  }
 0x2bd   : > { %2542 = vmatprep.subr.bf16.mxu1 %v3154_v0 }
 0x30c   : > { %v1179_v53 = vpop.f32.mrb[4].mxu1 }
 0x30d   : > { %v2516_v54 = vpop.f32.mrb[5].mxu1  ;;  %v1324_v55 = vsel %vm1323_vm2, %v1179_v53, -inf }
 0x30e   : > { %1325 = vmax.xlane.f32.xlu0 %v1324_v55  ;;  %v1182_v56 = vpop.f32.mrb[6].mxu1 }
 0x30f   : > { %v2517_v57 = vpop.f32.mrb[7].mxu1 }
 0x37e   : > { %v1225_v62 = vpop.f32.mrb[8].mxu1 }
 0x37f   : > { %v2522_v1 = vpop.f32.mrb[9].mxu1  ;;  %v1327_v2 = vsel %vm1323_vm2, %v1225_v62, -inf }
 0x380   : > { %1328 = vmax.xlane.f32.xlu1 %v1327_v2  ;;  %v1228_v5 = vpop.f32.mrb[10].mxu1  ;;  %v2731_v2 = vld [vmem:[#allocation13] sm:$0xff]  }
 0x381   : > { %v2523_v6 = vpop.f32.mrb[11].mxu1  ;;  %2561 = vmatpush3.bf16.msra.mxu0 %v2731_v2  ;;  %v2734_v5 = vld [vmem:[#allocation13 + $0x18] sm:$0xff]   ;;  %v2771_v2 = vld [vmem:[#allocation16 + $0x60] sm:$0xff]  }
 0x382   : > { %2562 = vmatprep.subr.bf16.mxu0 %v3154_v0  ;;  %v2735_v6 = vld [vmem:[#allocation13 + $0x20] sm:$0xff]  }
 0x386   : > { %v1271_v8 = vpop.f32.mrb[12].mxu1 }
 0x387   : > { %v2528_v9 = vpop.f32.mrb[13].mxu1  ;;  %v1330_v10 = vsel %vm1323_vm2, %v1271_v8, -inf }
 0x388   : > { %1331 = vmax.xlane.f32.xlu0 %v1330_v10  ;;  %v1274_v11 = vpop.f32.mrb[14].mxu1 }
 0x389   : > { %v2529_v12 = vpop.f32.mrb[15].mxu1 }
 0x38a   : > { %v2738_v12 = vld [vmem:[#allocation13 + $0x38] sm:$0xff]  }
 0x38e   : > { %v1317_v13 = vpop.f32.mrb[16].mxu1 }
 0x38f   : > { %v2534_v14 = vpop.f32.mrb[17].mxu1  ;;  %v1333_v15 = vsel %vm1323_vm2, %v1317_v13, -inf }
 0x390   : > { %1334 = vmax.xlane.f32.xlu0 %v1333_v15  ;;  %v1320_v16 = vpop.f32.mrb[18].mxu1 }
 0x391   : > { %v2535_v18 = vpop.f32.mrb[19].mxu1 }
 0x39b   : > { %v1326_v19 = vpop.xlane.xlu0 %1325 }
 0x39c   : > { %v1336_v20 = vsub.f32 %v1179_v53, %v1326_v19 }
 0x39e   : > { %v1340_v21 = vmul.f32 1.442695, %v1336_v20 }
 0x3a0   : > { %2779 = vpow2.f32 %v1340_v21 }
 0x3aa   : > { %v2780_v22 = vpop.eup %2779 }
 0x3ab   : > { %v1348_v23 = vsel %vm1323_vm2, %v2780_v22, 0.0 }
 0x3ac   : > { %1349 = vadd.xlane.f32.xlu1 %v1348_v23 }
 0x3bd   : > { %1132 = vrot.lane.b32.xlu1 %v1116_v3, %s3157_s4 }
 0x40d   : > { %v1329_v24 = vpop.xlane.xlu1 %1328 }
 0x40e   : > { %v1337_v25 = vsub.f32 %v1225_v62, %v1329_v24 }
 0x410   : > { %v1342_v26 = vmul.f32 1.442695, %v1337_v25 }
 0x412   : > { %2781 = vpow2.f32 %v1342_v26 }
 0x415   : > { %v1332_v27 = vpop.xlane.xlu0 %1331 }
 0x416   : > { %v1338_v28 = vsub.f32 %v1271_v8, %v1332_v27  ;;  %v2737_v8 = vld [vmem:[#allocation13 + $0x30] sm:$0xff]  }
 0x418   : > { %v1344_v29 = vmul.f32 1.442695, %v1338_v28 }
 0x41a   : > { %2783 = vpow2.f32 %v1344_v29 }
 0x41c   : > { %v2782_v30 = vpop.eup %2781 }
 0x41d   : > { %v1335_v31 = vpop.xlane.xlu0 %1334  ;;  %v1351_v32 = vsel %vm1323_vm2, %v2782_v30, 0.0 }
 0x41e   : > { %v1339_v33 = vsub.f32 %v1317_v13, %v1335_v31  ;;  %1352 = vadd.xlane.f32.xlu0 %v1351_v32  ;;  %v2739_v32 = vld [vmem:[#allocation14] ss:$8 sps:$4 sm:$0xff]  }
 0x420   : > { %v1346_v34 = vmul.f32 1.442695, %v1339_v33  ;;  %v2741_v33 = vld [vmem:[#allocation14 + $0x4] ss:$8 sps:$4 sm:$0xff]  }
 0x422   : > { %2785 = vpow2.f32 %v1346_v34  ;;  %v2744_v34 = vld [vmem:[#allocation14 + $0x14] ss:$8 sps:$4 sm:$0xff]  }
 0x424   : > { %v2784_v35 = vpop.eup %2783 }
 0x425   : > { %v1354_v36 = vsel %vm1323_vm2, %v2784_v35, 0.0 }
 0x426   : > { %1355 = vadd.xlane.f32.xlu1 %v1354_v36  ;;  %v2328_v36 = vld [vmem:[%s3920_s19] ss:$0 sm:$0xff]  ;;  %s3927_s19 = sld [smem:[#allocation43_spill]] }
 0x42c   : > { %v2786_v37 = vpop.eup %2785 }
 0x42d   : > { %v1357_v38 = vsel %vm1323_vm2, %v2786_v37, 0.0 }
 0x42e   : > { %1358 = vadd.xlane.f32.xlu0 %v1357_v38 }
 0x437   : > { %1136 = vrot.lane.b32.xlu1 %v1116_v3, %s3158_s16 }
 0x439   : > { %v1350_v39 = vpop.xlane.xlu1 %1349 }
 0x43a   : > { %2787 = vrcp.f32 %v1350_v39 }
 0x43d   : > { %v1133_v41 = vpop.permute.xlu1 %1132 }
 0x43e   : > { %v1423_v44 = vsel %vm1375_vm3, %v1133_v41, 0 }
 0x444   : > { %v2788_v40 = vpop.eup %2787  ;;  %1134 = vrot.lane.b32.xlu0 %v1116_v3, %s3156_s18  ;;  %v2732_v3 = vld [vmem:[#allocation13 + $0x8] sm:$0xff]  }
 0x445   : > { %v1364_v42 = vmul.f32 %v2788_v40, %v2780_v22  ;;  %2563 = vmatpush3.bf16.msra.mxu0 %v2732_v3  ;;  %v2772_v3 = vld [vmem:[#allocation16 + $0x20] sm:$0xff]  }
 0x446   : > { %2564 = vmatprep.subr.bf16.mxu0 %v3154_v0 }
 0x447   : > { %v1368_v43 = vpack.c.bf16 %v1364_v42, %v1364_v42 }
 0x449   : > { %2539 = vmatmul.mubr.msk.bf16.vlgmr.msra.gmra.mrb[20].mxu1 %vm1323_vm2, %v1368_v43  ;;  %2565 = vmatpush3.bf16.msra.mxu0 %v2733_v4  ;;  %v2773_v4 = vld [vmem:[#allocation16 + $0x68] sm:$0xff]  }
 0x44a   : > { %2543 = vmatpush3.bf16.msra.mxu1 %v1423_v44  ;;  %2544 = vmatprep.mubr.msk.bf16.mxu1 %vm3155_vm0, %v3154_v0 }
 0x44b   : > { %2548 = vmatprep.subr.bf16.mxu1 %v3154_v0  ;;  %2566 = vmatprep.subr.bf16.mxu0 %v3154_v0 }
 0x44d   : > { %2567 = vmatpush3.bf16.msra.mxu0 %v2734_v5  ;;  %v2774_v5 = vld [vmem:[#allocation16 + $0x28] sm:$0xff]  }
 0x44e   : > { %2568 = vmatprep.subr.bf16.mxu0 %v3154_v0 }
 0x451   : > { %2569 = vmatpush3.bf16.msra.mxu0 %v2735_v6 }
 0x452   : > { %2570 = vmatprep.subr.bf16.mxu0 %v3154_v0 }
 0x455   : > { %2571 = vmatpush3.bf16.msra.mxu0 %v2736_v7 }
 0x456   : > { %2572 = vmatprep.subr.bf16.mxu0 %v3154_v0 }
 0x459   : > { %2573 = vmatpush3.bf16.msra.mxu0 %v2737_v8 }
 0x45a   : > { %2574 = vmatprep.subr.bf16.mxu0 %v3154_v0 }
 0x45d   : > { %2575 = vmatpush3.bf16.msra.mxu0 %v2738_v12 }
 0x4ab   : > { %v1353_v45 = vpop.xlane.xlu0 %1352 }
 0x4ac   : > { %2789 = vrcp.f32 %v1353_v45  ;;  %v2747_v45 = vld [vmem:[#allocation14 + $0x24] ss:$8 sps:$4 sm:$0xff]  }
 0x4b3   : > { %v1356_v46 = vpop.xlane.xlu1 %1355 }
 0x4b4   : > { %2791 = vrcp.f32 %v1356_v46  ;;  %v2745_v46 = vld [vmem:[#allocation14 + $0x20] ss:$8 sps:$4 sm:$0xff]  }
 0x4b6   : > { %v2790_v47 = vpop.eup %2789 }
 0x4b7   : > { %v1365_v48 = vmul.f32 %v2790_v47, %v2782_v30  ;;  %v1137_v55 = vpop.permute.xlu1 %1136  ;;  %v2750_v47 = vld [vmem:[#allocation14 + $0x34] ss:$8 sps:$4 sm:$0xff]  }
 0x4b8   : > { %v1515_v57 = vsel %vm1375_vm3, %v1137_v55, 0  ;;  %v2762_v55 = vld [vmem:[#allocation14 + $0x74] ss:$8 sps:$4 sm:$0xff]  }
 0x4b9   : > { %v1369_v49 = vpack.c.bf16 %v1365_v48, %v1365_v48  ;;  %v2748_v48 = vld [vmem:[#allocation14 + $0x30] ss:$8 sps:$4 sm:$0xff]  }
 0x4bb   : > { %v1359_v50 = vpop.xlane.xlu0 %1358  ;;  %2545 = vmatmul.mubr.msk.bf16.vlgmr.msra.gmra.mrb[24].mxu1 %vm1323_vm2, %v1369_v49  ;;  %v2751_v49 = vld [vmem:[#allocation14 + $0x40] ss:$8 sps:$4 sm:$0xff]  }
 0x4bc   : > { %2793 = vrcp.f32 %v1359_v50  ;;  %2550 = vmatprep.mubr.msk.bf16.mxu1 %vm3155_vm0, %v3154_v0  ;;  %v2756_v50 = vld [vmem:[#allocation14 + $0x54] ss:$8 sps:$4 sm:$0xff]  }
 0x4be   : > { %v2792_v51 = vpop.eup %2791 }
 0x4bf   : > { %v1366_v52 = vmul.f32 %v2792_v51, %v2784_v35  ;;  %v1135_v53 = vpop.permute.xlu0 %1134  ;;  %v2742_v35 = vld [vmem:[#allocation14 + $0x10] ss:$8 sps:$4 sm:$0xff]   ;;  %v3159_v51 = vmov 0  }
 0x4c0   : > { %v1469_v54 = vsel %vm1375_vm3, %v1135_v53, 0  ;;  %v2759_v53 = vld [vmem:[#allocation14 + $0x64] ss:$8 sps:$4 sm:$0xff]  }
 0x4c1   : > { %2549 = vmatpush3.bf16.msra.mxu1 %v1469_v54  ;;  %v1370_v56 = vpack.c.bf16 %v1366_v52, %v1366_v52  ;;  %v2754_v52 = vld [vmem:[#allocation14 + $0x50] ss:$8 sps:$4 sm:$0xff]   ;;  %v2757_v54 = vld [vmem:[#allocation14 + $0x60] ss:$8 sps:$4 sm:$0xff]  }
 0x4c2   : > { %2554 = vmatprep.subr.bf16.mxu1 %v3154_v0 }
 0x4c4   : > { %2551 = vmatmul.mubr.msk.bf16.vlgmr.msra.gmra.mrb[28].mxu1 %vm1323_vm2, %v1370_v56  ;;  %v2760_v56 = vld [vmem:[#allocation14 + $0x70] ss:$8 sps:$4 sm:$0xff]  }
 0x4c5   : > { %2555 = vmatpush3.bf16.msra.mxu1 %v1515_v57  ;;  %2556 = vmatprep.mubr.msk.bf16.mxu1 %vm3155_vm0, %v3154_v0  ;;  %v2763_v57 = vld [vmem:[#allocation16 + $0x40] sm:$0xff]  }
 0x4c6   : > { %v2794_v58 = vpop.eup %2793  ;;  %1831 = vmatprep.subr.bf16.mxu1 %v2741_v33  ;;  %2430 = vmatprep.subr.bf16.mxu0 %v2763_v57 }
 0x4c7   : > { %v1367_v59 = vmul.f32 %v2794_v58, %v2786_v37  ;;  %v1691_v37 = vunpack.c.l.bf16 %v3637_v17  ;;  %v2753_v17 = vld [vmem:[#allocation14 + $0x44] ss:$8 sps:$4 sm:$0xff]  }
 0x4c8   : > { %v2764_v58 = vld [vmem:[#allocation16] sm:$0xff]  }
 0x4c9   : > { %v1371_v60 = vpack.c.bf16 %v1367_v59, %v1367_v59  ;;  %v2765_v59 = vld [vmem:[#allocation16 + $0x48] sm:$0xff]  }
 0x4cc   : > { %2557 = vmatmul.mubr.msk.bf16.vlgmr.msra.gmra.mrb[32].mxu1 %vm1323_vm2, %v1371_v60  ;;  %v2766_v60 = vld [vmem:[#allocation16 + $0x8] sm:$0xff]  }
 0x4cd   : > { %1832 = vmatpush1.bf16.msra.mxu1 %v2739_v32  ;;  %1863 = vmatprep.mubr.bf16.mxu1 %v3159_v51 }
 0x4ce   : > { %1833 = vmatprep.subr.bf16.mxu1 %v2744_v34 }
 0x4d1   : > { %1834 = vmatpush1.bf16.msra.mxu1 %v2742_v35 }
 0x4d2   : > { %1835 = vmatprep.subr.bf16.mxu1 %v2747_v45 }
 0x4d5   : > { %1836 = vmatpush1.bf16.msra.mxu1 %v2745_v46 }
 0x4d6   : > { %1837 = vmatprep.subr.bf16.mxu1 %v2750_v47 }
 0x4d9   : > { %1838 = vmatpush1.bf16.msra.mxu1 %v2748_v48 }
 0x4da   : > { %1839 = vmatprep.subr.bf16.mxu1 %v2753_v17 }
 0x4dd   : > { %1840 = vmatpush1.bf16.msra.mxu1 %v2751_v49 }
 0x4de   : > { %1841 = vmatprep.subr.bf16.mxu1 %v2756_v50 }
 0x4e1   : > { %1842 = vmatpush1.bf16.msra.mxu1 %v2754_v52 }
 0x4e2   : > { %1843 = vmatprep.subr.bf16.mxu1 %v2759_v53 }
 0x4e5   : > { %1844 = vmatpush1.bf16.msra.mxu1 %v2757_v54 }
 0x4e6   : > { %1845 = vmatprep.subr.bf16.mxu1 %v2762_v55 }
 0x4e9   : > { %1846 = vmatpush1.bf16.msra.mxu1 %v2760_v56 }
 0x51c   : > { %v1413_v61 = vpop.f32.mrb[20].mxu1 }
 0x51d   : > { %v2540_v62 = vpop.f32.mrb[21].mxu1  ;;  %v1557_v0 = vpack.c.bf16 %v1413_v61, %v1413_v61  ;;  %v2767_v61 = vld [vmem:[#allocation16 + $0x50] sm:$0xff]  }
 0x51e   : > { %v1416_v63 = vpop.f32.mrb[22].mxu1  ;;  %v2768_v62 = vld [vmem:[#allocation16 + $0x10] sm:$0xff]  }
 0x51f   : > { %v2541_v1 = vpop.f32.mrb[23].mxu1  ;;  %v2769_v63 = vld [vmem:[#allocation16 + $0x58] sm:$0xff]  }
 0x520   : > { %v2770_v1 = vld [vmem:[#allocation16 + $0x18] sm:$0xff]  }
 0x58e   : > { %v1459_v9 = vpop.f32.mrb[24].mxu1 }
 0x58f   : > { %v1558_v10 = vpack.c.bf16 %v1459_v9, %v1459_v9  ;;  %v2546_v11 = vpop.f32.mrb[25].mxu1 }
 0x590   : > { %v1462_v13 = vpop.f32.mrb[26].mxu1 }
 0x591   : > { %1562 = vrot.lane.b32.xlu1 %v1558_v10, %s3158_s16  ;;  %v2547_v14 = vpop.f32.mrb[27].mxu1 }
 0x597   : > { %v1505_v15 = vpop.f32.mrb[28].mxu1 }
 0x598   : > { %v1559_v16 = vpack.c.bf16 %v1505_v15, %v1505_v15  ;;  %v2552_v18 = vpop.f32.mrb[29].mxu1  ;;  %v2337_v15 = vld [vmem:[%s3921_s28] ss:$0 sm:$0xff]  ;;  %s2097_s28 = sshll.u32 %s775_s3, 4  ;;  %s3775_s28 = int_to_ptr.vmem [resolvable:$true] %s2097_s28 }
 0x599   : > { %v1508_v19 = vpop.f32.mrb[30].mxu1  ;;  %v2338_v18 = vld [vmem:[%s3922_s15] ss:$0 sm:$0xff]  ;;  %s3928_s15 = sld [smem:[#allocation44_spill]]  ;;  %p3064_p7 = scmp.lt.s32.totalorder %s3775_s28, %s3062_s17 }
 0x59a   : > { %1565 = vrot.lane.b32.xlu0 %v1559_v16, %s3156_s18  ;;  %v2553_v20 = vpop.f32.mrb[31].mxu1  ;;  %s3924_s18 = sld [smem:[#allocation39_spill]] }
 0x59f   : > { %v1551_v21 = vpop.f32.mrb[32].mxu1  ;;  %s3773_s14 = scalar_lea.hbm %s3928_s15, %s2375_s24 }
 0x5a0   : > { %v1560_v22 = vpack.c.bf16 %v1551_v21, %v1551_v21  ;;  %v2558_v23 = vpop.f32.mrb[33].mxu1 }
 0x5a1   : > { %v1554_v24 = vpop.f32.mrb[34].mxu1  ;;  %v2776_v23 = vld [vmem:[#allocation16 + $0x30] sm:$0xff]  }
 0x5a2   : > { %1568 = vrot.lane.b32.xlu1 %v1560_v22, %s3157_s4  ;;  %v2559_v25 = vpop.f32.mrb[35].mxu1  ;;  %v2775_v22 = vld [vmem:[#allocation16 + $0x70] sm:$0xff]   ;;  %v2777_v24 = vld [vmem:[#allocation16 + $0x78] sm:$0xff]  }
 0x5a3   : > { %v2778_v25 = vld [vmem:[#allocation16 + $0x38] sm:$0xff]  }
 0x603   : > { %v1563_v26 = vpop.permute.xlu1 %1562 }
 0x604   : > { %v1572_v28 = vsel %vm1138_vm1, %v1557_v0, %v1563_v26  ;;  %v1741_v26 = vlaneseq }
 0x606   : > { %v1742_v0 = vshrl.u32 %v1741_v26, 7 }
 0x60c   : > { %v1566_v27 = vpop.permute.xlu0 %1565 }
 0x60d   : > { %v1575_v29 = vsel %vm1573_vm4, %v1572_v28, %v1566_v27  ;;  %v1743_v27 = vsub.s32 0, %v1742_v0  ;;  %v1738_v28 = vld [vmem:[%s3923_s22] sm:$0x3]  ;;  %s3057_s22 = scalar_lea.vmem %s3775_s28, 64 }
 0x60e   : > { %p3058_p6 = scmp.ne.s32.totalorder %s3775_s28, %s3057_s22  ;;  %p3065_p12 = scmp.lt.s32.totalorder %s3063_s25, %s3057_s22 }
 0x610   : > { %p3059_p0 = pnand %p3058_p6, %p3929_p1  ;;  %p3066_p10 = por %p3065_p12, %p3064_p7 }
 0x612   : > { %p3060_p4 = pneg %p3059_p0 }
 0x614   : > { %v1569_v30 = vpop.permute.xlu1 %1568  ;;  %p3067_p2 = pnand %p3066_p10, %p3060_p4 }
 0x615   : > { %v1578_v31 = vsel %vm1576_vm5, %v1575_v29, %v1569_v30  ;;  %v1747_v29 = vsub.s32 1, %v1742_v0  ;;  %v1744_v30 = vrot.slane %v1738_v28, %v1743_v27 }
 0x616   : > { %2577 = vmatmul.mubr.bf16.vlgmr.msra.gmra.mrb[8].mxu0 %v1578_v31 }
 0x617   : > { %2431 = vmatpush3.bf16.msra.mxu0 %v2764_v58  ;;  %v1748_v31 = vrot.slane %v1738_v28, %v1747_v29 }
 0x618   : > { %2432 = vmatprep.subr.bf16.mxu0 %v2765_v59  ;;  %v2372_v59 = vld [vmem:[%s3925_s29] ss:$0 sm:$0xff] }
 0x61b   : > { %2433 = vmatpush3.bf16.msra.mxu0 %v2766_v60 }
 0x61c   : > { %2434 = vmatprep.subr.bf16.mxu0 %v2767_v61  ;;  %v2373_v61 = vld [vmem:[%s3927_s19] ss:$0 sm:$0xff] }
 0x61f   : > { %2435 = vmatpush3.bf16.msra.mxu0 %v2768_v62 }
 0x620   : > { %2436 = vmatprep.subr.bf16.mxu0 %v2769_v63 }
 0x623   : > { %2437 = vmatpush3.bf16.msra.mxu0 %v2770_v1 }
 0x624   : > { %2438 = vmatprep.subr.bf16.mxu0 %v2771_v2 }
 0x627   : > { %2439 = vmatpush3.bf16.msra.mxu0 %v2772_v3 }
 0x628   : > { %2440 = vmatprep.subr.bf16.mxu0 %v2773_v4 }
 0x62b   : > { %2441 = vmatpush3.bf16.msra.mxu0 %v2774_v5 }
 0x62c   : > { %2442 = vmatprep.subr.bf16.mxu0 %v2775_v22 }
 0x62f   : > { %2443 = vmatpush3.bf16.msra.mxu0 %v2776_v23 }
 0x630   : > { %2444 = vmatprep.subr.bf16.mxu0 %v2777_v24 }
 0x633   : > { %2445 = vmatpush3.bf16.msra.mxu0 %v2778_v25 }
 0x6e9   : > { %v1685_v38 = vpop.f32.mrb[8].mxu0 }
 0x6ea   : > { %v1686_v39 = vadd.f32 %v2328_v36, %v1685_v38  ;;  %v2578_v40 = vpop.f32.mrb[9].mxu0 }
 0x6eb   : > { %v1688_v41 = vpop.f32.mrb[10].mxu0 }
 0x6ec   : > { %v3744_v42 = vadd.f32 %v1691_v37, %v1686_v39  ;;  %v2579_v43 = vpop.f32.mrb[11].mxu0 }
 0x6ed   : > { %v2355_v43 = vld [vmem:[%s3924_s18] ss:$0 sm:$0xff] }
 0x6ee   : > { %1693 = vadd.xlane.f32.xlu0 %v3744_v42  ;;  %v1696_v44 = vmul.f32 %v3744_v42, %v3744_v42 }
 0x6f0   : > { %1697 = vadd.xlane.f32.xlu1 %v1696_v44 }
 0x77b   : > { %v1694_v6 = vpop.xlane.xlu0 %1693 }
 0x77c   : > { %v1695_v7 = vmul.f32 0.0078125, %v1694_v6 }
 0x77d   : > { %v1698_v8 = vpop.xlane.xlu1 %1697 }
 0x77e   : > { %v1700_v9 = vmul.f32 %v1695_v7, %v1695_v7  ;;  %v1699_v10 = vmul.f32 0.0078125, %v1698_v8  ;;  %v1702_v13 = vsub.f32 %v3744_v42, %v1695_v7 }
 0x780   : > { %v1701_v11 = vsub.f32 %v1699_v10, %v1700_v9 }
 0x782   : > { %v1703_v12 = vadd.f32 1e-05, %v1701_v11 }
 0x784   : > { %2795 = vrsqrt.f32 %v1703_v12 }
 0x78e   : > { %v2796_v14 = vpop.eup %2795 }
 0x78f   : > { %v1705_v16 = vmul.f32 %v2796_v14, %v1702_v13 }
 0x791   : > { %v1713_v19 = vmul.f32 %v2337_v15, %v1705_v16 }
 0x793   : > { %v1721_v20 = vadd.f32 %v2338_v18, %v1713_v19 }
 0x795   : > { %v1739_v21 = vpack.c.bf16 %v1721_v20, %v1721_v20 }
 0x797   : > { %1864 = vmatmul.mubr.bf16.vlgmr.msra.gmra.mrb[36].mxu1 %v1739_v21 }
 0x86a   : > { %v1865_v32 = vpop.f32.mrb[36].mxu1 }
 0x86b   : > { %v1866_v33 = vadd.f32 %v1865_v32, %v1744_v30  ;;  %v1867_v34 = vpop.f32.mrb[37].mxu1 }
 0x86c   : > { %v1868_v35 = vadd.f32 %v1867_v34, %v1748_v31  ;;  %v1869_v36 = vpop.f32.mrb[38].mxu1 }
 0x86d   : > { %v1872_v37 = vmax.f32 %v1866_v33, 0.0  ;;  %v1870_v38 = vpop.f32.mrb[39].mxu1 }
 0x86e   : > { %v1873_v39 = vmax.f32 %v1868_v35, 0.0 }
 0x86f   : > { %v1906_v41 = vpack.c.bf16 %v1872_v37, %v1872_v37 }
 0x870   : > { %v1907_v40 = vpack.c.bf16 %v1873_v39, %v1873_v39 }
 0x872   : > { %2043 = vmatprep.mubr.bf16.mxu0 %v1907_v40 }
 0x873   : > { %2044 = vmatmul.mubr.bf16.vlgmr.msra.gmra.mrb[12].mxu0 %v1906_v41 }
 0x946   : > { %v2446_v42 = vpop.f32.mrb[12].mxu0 }
 0x947   : > { %v2447_v44 = vpop.f32.mrb[13].mxu0 }
 0x948   : > { %v2448_v45 = vadd.f32 %v2447_v44, %v2446_v42  ;;  %v2449_v46 = vpop.f32.mrb[14].mxu0 }
 0x949   : > { %v2450_v47 = vpop.f32.mrb[15].mxu0 }
 0x94a   : > { %v2046_v48 = vadd.f32 %v2448_v45, %v2355_v43 }
 0x94c   : > { %v2051_v17 = vadd.f32 %v2046_v48, %v1721_v20 }
 0x94e   : > { %2052 = vadd.xlane.f32.xlu0 %v2051_v17  ;;  %v2055_v49 = vmul.f32 %v2051_v17, %v2051_v17 }
 0x952   : > { %2056 = vadd.xlane.f32.xlu0 %v2055_v49 }
 0x9db   : > { %v2053_v50 = vpop.xlane.xlu0 %2052 }
 0x9dc   : > { %v2054_v51 = vmul.f32 0.0078125, %v2053_v50 }
 0x9de   : > { %v2059_v53 = vmul.f32 %v2054_v51, %v2054_v51  ;;  %v2061_v57 = vsub.f32 %v2051_v17, %v2054_v51 }
 0x9df   : > { %v2057_v52 = vpop.xlane.xlu0 %2056 }
 0x9e0   : > { %v2058_v54 = vmul.f32 0.0078125, %v2057_v52 }
 0x9e2   : > { %v2060_v55 = vsub.f32 %v2058_v54, %v2059_v53 }
 0x9e4   : > { %v2062_v56 = vadd.f32 1e-05, %v2060_v55 }
 0x9e6   : > { %2797 = vrsqrt.f32 %v2062_v56 }
 0x9f0   : > { %v2798_v58 = vpop.eup %2797 }
 0x9f1   : > { %v2064_v60 = vmul.f32 %v2798_v58, %v2061_v57 }
 0x9f3   : > { %v2072_v62 = vmul.f32 %v2372_v59, %v2064_v60 }
 0x9f5   : > { %v2080_v63 = vadd.f32 %v2373_v61, %v2072_v62 }
 0x9f7   : > { %v2081_v1 = vpack.c.bf16 %v2080_v63, %v2080_v63 }
 0x9f9   : > { %2082 = vst [vmem:[%s775_s3] sm:$0xf] %v2081_v1 }
 0x9fa   : > { %3070 = shalt.err (!%p3067_p2)
}
 0x9fb   : > { %s3071_s26 = scalar_lea.hbm %s3773_s14, 64  ;;  %s3075_s4 = scalar_lea.hbm %s3928_s15, 128 }
 0x9fc   : > { %p3072_p8 = scmp.ne.s32.totalorder %s3773_s14, %s3071_s26  ;;  %p3076_p9 = scmp.lt.u32.totalorder %s3773_s14, %s3928_s15 }
 0x9fd   : > { %p3077_p11 = scmp.lt.u32.totalorder %s3075_s4, %s3071_s26  ;;  %p3079_p6 = scmp.lt.u32.totalorder %s3071_s26, %s3773_s14 }
 0x9fe   : > { %p3073_p13 = pnand %p3072_p8, %p3929_p1 }
 0x9ff   : > { %p3078_p3 = por %p3077_p11, %p3076_p9 }
 0xa00   : > { %p3074_p5 = pneg %p3073_p13 }
 0xa01   : > { %p3080_p0 = por %p3079_p6, %p3078_p3 }
 0xa03   : > { %p3081_p4 = pnand %p3080_p0, %p3074_p5 }
 0xa05   : > { %3084 = shalt.err (!%p3081_p4)
}
 0xa06   : > { %2610 = dma.vmem_to_hbm [thread:$0]  (%p3929_p1), %s3775_s28, 64, %s3773_s14, %s2084_s27  }
 0xa07 PF: > { %s3930_s10 = sld [smem:[#allocation24_spill]]  ;;  %s3931_s12 = sld [smem:[#allocation29_spill]] }
 0xa08   : > { %s3932_s19 = sld [smem:[#allocation25_spill]] }
 0xa0d   : > { %s2109_s24 = sand.u32 1, %s3930_s10   ;;  %p3933_p7 = scmp.ne.s32.totalorder %s3931_s12, 0 }
 0xa0e   : > { %p3934_p12 = scmp.ge.s32.totalorder %s3932_s19, 2  ;;  %s2110_s3 = scalar_lea.sflag [#allocation4], %s2109_s24 }
 0xa10   : > { %p2642_p10 = pnand %p3934_p12, %p3933_p7 }
 0xa12   : > { %3122 = dma.done.wait (!%p2642_p10), %s2110_s3, 64  }
 0xa13   : > { %3124 = vsyncadd (!%p2642_p10), %s2110_s3, 4294967232  ;;  %s3935_s21 = sld [smem:[#allocation26_spill]]  ;;  %s3936_s5 = sld [smem:[#allocation27_spill]] }
 0xa14   : > { %s3937_s0 = smov %s3131_s30  ;;  %s3938_s30 = smov %s3135_s20 }
 0xa19   : > { %p38_p2 = scmp.ge.s32.totalorder %s3935_s21, 4   ;;  %s3939_s20 = smov %s3936_s5 }
 0xa1b   :  { %40 = sbr.rel (!%p38_p2) target bundleno = 26 (0x1a), region = 189 }
 0xa22   :  { %2115 = vsyncpa [#allocation3], 1 }
 0xa23   :  { %2117 = vsyncpa [#allocation3 + $0x1], 1 }
 0xa24   :  { %2118 = vsyncpa [#allocation6], 1 }
 0xa25   :  { %2120 = vsyncpa [#allocation6 + $0x1], 1 }
 0xa26   :  { %2121 = vsyncpa [#allocation9], 1 }
 0xa27   :  { %2122 = vsyncpa [#allocation12], 1 }
 0xa28   :  { %2123 = vsyncpa [#allocation15], 1 }
 0xa29   :  { %2124 = vsyncpa [#allocation4], 1 }
 0xa2a   :  { %2126 = vsyncpa [#allocation4 + $0x1], 1 }

</bundles_post_ra>
